<compile_context>
chip_gen: v5e
topology: v5e:2x2
jax: 0.10.0
libtpu: 0.0.40
codegen_flags: <defaults>
</compile_context>

<pallas_src>
import functools
import math

import jax
import jax.numpy as jnp
from jax import lax
from jax.experimental import pallas as pl
from jax.experimental.pallas import tpu as pltpu

LANE = 128          # pad all feature dims to the TPU lane width
NEG_BIG = -1e30     # mask value for padded class columns in log_softmax (f32 only)


# ----------------------------- Fused Pallas kernel ----------------------------- #

def _fused_gcn_stack_kernel(fea_ref, adj_ref, wcat_ref, shift_ref, out_ref,
                            *, nlayers, nclass, fpad):
    """Whole layer stack + log_softmax in one invocation (no grid).

    fea_ref:   (N, fpad)        bf16  padded node features
    adj_ref:   (N, N)           bf16  dense normalized adjacency
    wcat_ref:  (L, fpad, 2*fpad) bf16  [W | W_self] per layer (BN-folded, padded)
    shift_ref: (L, 1, fpad)     f32   folded bias + BN shift
    out_ref:   (N, fpad)        f32   log_softmax output (padded lanes are garbage)
    """
    x = fea_ref[...]                                    # bf16 activations (resident)
    adj = adj_ref[...]                                  # bf16 adjacency

    for l in range(nlayers):                            # static unroll (L is small)
        # One 256-wide MXU pass computes both x@W and x@W_self (f32 accumulation).
        both = jnp.dot(x, wcat_ref[l], preferred_element_type=jnp.float32)
        support = both[:, :fpad].astype(jnp.bfloat16)   # slice at lane-tile boundary
        self_t = both[:, fpad:]
        prop = jnp.dot(adj, support, preferred_element_type=jnp.float32)
        out = prop + self_t + shift_ref[l]              # folded bias + BatchNorm (eval)

        if l < nlayers - 1:
            x = jnp.maximum(out, 0.0).astype(jnp.bfloat16)   # ReLU, stay in bf16
        else:
            # Fused log_softmax(dim=1) over the real class columns (f32; padded lanes
            # masked with a large-negative so exp underflows to 0).
            lane = lax.broadcasted_iota(jnp.int32, out.shape, 1)
            logits = jnp.where(lane < nclass, out, NEG_BIG)
            m = jnp.max(logits, axis=1, keepdims=True)
            s = logits - m
            lse = jnp.log(jnp.sum(jnp.exp(s), axis=1, keepdims=True))
            out_ref[...] = s - lse


# ---------------------------------- Wrapper ------------------------------------ #

def _pad_cols(x, width):
    n, c = x.shape
    return jnp.zeros((n, width), x.dtype).at[:, :c].set(x)


def gcn_model_forward(fea, adj, wcat_stack, shift_stack, nclass):
    """fea: (N, nfeat) f32, adj: (N, N) f32 dense normalized adjacency.
    wcat_stack: (L, LANE, 2*LANE) bf16 = [W | W_self], BN-folded, zero-padded.
    shift_stack: (L, 1, LANE) f32 (bias*scale + shift, zero-padded)."""
    n = fea.shape[0]
    nlayers, fpad, _ = wcat_stack.shape

    fea_p16 = _pad_cols(fea, fpad).astype(jnp.bfloat16)     # (N, 128) bf16
    adj16 = adj.astype(jnp.bfloat16)                        # (N, N)  bf16

    flops = int(nlayers * (2 * n * fpad * (2 * fpad) + 2 * n * n * fpad))
    bytes_accessed = int(adj16.size * 2 + fea_p16.size * 2 + n * fpad * 4
                         + wcat_stack.size * 2 + shift_stack.size * 4)

    kernel = functools.partial(_fused_gcn_stack_kernel,
                               nlayers=nlayers, nclass=nclass, fpad=fpad)

    out_padded = pl.pallas_call(
        kernel,
        out_shape=jax.ShapeDtypeStruct((n, fpad), jnp.float32),
        # No grid: everything (activations, adjacency, stacked weights) is resident in
        # VMEM for a single invocation -> zero pipeline-step overhead.
        in_specs=[
            pl.BlockSpec(memory_space=pltpu.MemorySpace.VMEM),   # features (bf16)
            pl.BlockSpec(memory_space=pltpu.MemorySpace.VMEM),   # adjacency (bf16)
            pl.BlockSpec(memory_space=pltpu.MemorySpace.VMEM),   # Wcat stack (bf16)
            pl.BlockSpec(memory_space=pltpu.MemorySpace.VMEM),   # shift stack (f32)
        ],
        out_specs=pl.BlockSpec(memory_space=pltpu.MemorySpace.VMEM),  # lane-dense out
        compiler_params=pltpu.CompilerParams(
            vmem_limit_bytes=48 * 1024 * 1024,   # explicit scoped-VMEM ceiling (v7x-safe)
        ),
        cost_estimate=pl.CostEstimate(
            flops=flops,
            transcendentals=n * fpad,            # exp over all lanes in the epilogue
            bytes_accessed=bytes_accessed),
    )(fea_p16, adj16, wcat_stack, shift_stack)

    return out_padded[:, :nclass]


# --------------------------- Parameter construction ---------------------------- #

def make_layer_params(key, fin, fout, fpad):
    """Mirror GraphConvolutionBS.reset_parameters(): uniform(-stdv, stdv),
    stdv = 1/sqrt(out_features). BatchNorm1d default init (gamma=1, beta=0,
    running_mean=0, running_var=1) evaluated with running stats and folded into the
    weights/bias. Returns zero-padded folded [W | W_self] + shift + raw params."""
    k1, k2, k3 = jax.random.split(key, 3)
    stdv = 1.0 / math.sqrt(fout)
    w = jax.random.uniform(k1, (fin, fout), jnp.float32, -stdv, stdv)
    w_self = jax.random.uniform(k2, (fin, fout), jnp.float32, -stdv, stdv)
    bias = jax.random.uniform(k3, (fout,), jnp.float32, -stdv, stdv)
    eps = 1e-5
    scale = jnp.full((fout,), 1.0 / math.sqrt(1.0 + eps), jnp.float32)
    shift = jnp.zeros((fout,), jnp.float32)
    # Fold:  ((adj@(xW) + xWs + b) * scale + shift)
    #      == adj@(x (W*scale)) + x (Ws*scale) + (b*scale + shift)
    w_f = w * scale[None, :]
    wself_f = w_self * scale[None, :]
    shift_f = bias * scale + shift
    wcat_p = jnp.zeros((fpad, 2 * fpad), jnp.float32)
    wcat_p = wcat_p.at[:fin, :fout].set(w_f)
    wcat_p = wcat_p.at[:fin, fpad:fpad + fout].set(wself_f)
    shift_p = jnp.zeros((fpad,), jnp.float32).at[:fout].set(shift_f)
    return wcat_p, shift_p, (w, w_self, bias, scale, shift)


# ------------------------------- References (jnp) ------------------------------ #

def _ref_forward_f32(fea, adj, raw_layers, relu_flags):
    """Pure-f32 reference matching the PyTorch module (eval mode)."""
    x = fea
    for (w, w_self, bias, scale, shift), relu in zip(raw_layers, relu_flags):
        out = adj @ (x @ w) + x @ w_self + bias
        out = out * scale + shift
        x = jnp.maximum(out, 0.0) if relu else out
    return x - jax.nn.logsumexp(x, axis=1, keepdims=True)


def _ref_forward_bf16(fea_p16, adj16, wcat16, shift, nclass, fpad):
    """Reference using the same bf16 casts / folded params / fused matmul as kernel."""
    x = fea_p16
    nlayers = wcat16.shape[0]
    for l in range(nlayers):
        both = jnp.dot(x, wcat16[l], preferred_element_type=jnp.float32)
        support = both[:, :fpad].astype(jnp.bfloat16)
        prop = jnp.dot(adj16, support, preferred_element_type=jnp.float32)
        out = prop + both[:, fpad:] + shift[l, 0]
        x = jnp.maximum(out, 0.0).astype(jnp.bfloat16) if l < nlayers - 1 else out
    logits = out[:, :nclass]
    return logits - jax.nn.logsumexp(logits, axis=1, keepdims=True)


# ------------------------------------ Main ------------------------------------- #

if __name__ == "__main__":
    N = 128          # number of graph nodes
    NFEAT = 16       # input feature dim
    NHID = 32        # hidden dim
    NCLASS = 8       # output classes
    NHIDLAYER = 1    # number of hidden blocks
    NBASELAYER = 2   # GCN layers per hidden block (MultiLayerGCNBlock)

    key = jax.random.PRNGKey(0)
    k_fea, k_adj, k_params = jax.random.split(key, 3)

    # Node features.
    fea = jax.random.normal(k_fea, (N, NFEAT), jnp.float32)

    # Dense symmetric-normalized adjacency with self loops: D^-1/2 (A+I) D^-1/2.
    a = jax.random.uniform(k_adj, (N, N), jnp.float32)
    a = (a + a.T) * 0.5
    a = jnp.where(a > 0.7, 1.0, 0.0) + jnp.eye(N, dtype=jnp.float32)
    deg = jnp.sum(a, axis=1)
    d_inv_sqrt = 1.0 / jnp.sqrt(deg)
    adj = a * d_inv_sqrt[:, None] * d_inv_sqrt[None, :]

    # Layer stack: ingc (relu) -> nhidlayer * nbaselayer hidden GCNs (relu)
    #              -> outgc (identity activation) -> log_softmax (fused in kernel).
    layer_dims = [(NFEAT, NHID, True)]
    for _ in range(NHIDLAYER):
        for _ in range(NBASELAYER):
            layer_dims.append((NHID, NHID, True))
    layer_dims.append((NHID, NCLASS, False))

    keys = jax.random.split(k_params, len(layer_dims))
    wcat_list, shift_list, raw_list = [], [], []
    for k, (fin, fout, _) in zip(keys, layer_dims):
        wcat_p, shift_p, raw = make_layer_params(k, fin, fout, LANE)
        wcat_list.append(wcat_p)
        shift_list.append(shift_p)
        raw_list.append(raw)

    wcat_stack = jnp.stack(wcat_list).astype(jnp.bfloat16)   # (L, 128, 256) bf16
    shift_stack = jnp.stack(shift_list)[:, None, :]          # (L, 1, 128)  f32

    out = gcn_model_forward(fea, adj, wcat_stack, shift_stack, NCLASS)
    out = jax.block_until_ready(out)
    assert out.shape == (N, NCLASS)

    # Check 1: bit-matched bf16 reference (same folded params / casts / fused matmul).
    fea_p16 = _pad_cols(fea, LANE).astype(jnp.bfloat16)
    ref16 = _ref_forward_bf16(fea_p16, adj.astype(jnp.bfloat16),
                              wcat_stack, shift_stack, NCLASS, LANE)
    assert jnp.allclose(out, ref16, atol=1e-3, rtol=1e-3), "mismatch vs bf16 reference"

    # Check 2: pure-f32 reference (true module semantics); loose tol for bf16 matmuls.
    relu_flags = [flag for (_, _, flag) in layer_dims]
    ref32 = _ref_forward_f32(fea, adj, raw_list, relu_flags)
    assert jnp.allclose(out, ref32, atol=7e-2, rtol=7e-2), "mismatch vs f32 reference"

    print("KERNEL_OK")
</pallas_src>

<mosaic_0001>
module attributes {stable_mosaic.version = 11 : i64} {
  func.func @_fused_gcn_stack_kernel(%arg0: memref<128x128xbf16, #tpu.memory_space<vmem>>, %arg1: memref<128x128xbf16, #tpu.memory_space<vmem>>, %arg2: memref<4x128x256xbf16, #tpu.memory_space<vmem>>, %arg3: memref<4x1x128xf32, #tpu.memory_space<vmem>>, %arg4: memref<128x128xf32, #tpu.memory_space<vmem>>) attributes {dimension_semantics = [], scalar_prefetch = 0 : i64, scratch_operands = 0 : i64, tpu.core_type = #tpu.core_type<tc>} {
    %c0 = arith.constant 0 : index
    %c0_0 = arith.constant 0 : index
    %0 = vector.load %arg0[%c0, %c0_0] : memref<128x128xbf16, #tpu.memory_space<vmem>>, vector<128x128xbf16>
    %c0_1 = arith.constant 0 : index
    %c0_2 = arith.constant 0 : index
    %1 = vector.load %arg1[%c0_1, %c0_2] : memref<128x128xbf16, #tpu.memory_space<vmem>>, vector<128x128xbf16>
    %c0_3 = arith.constant 0 : index
    %c0_4 = arith.constant 0 : index
    %c0_5 = arith.constant 0 : index
    %2 = vector.load %arg2[%c0_3, %c0_4, %c0_5] : memref<4x128x256xbf16, #tpu.memory_space<vmem>>, vector<1x128x256xbf16>
    %3 = vector.shape_cast %2 : vector<1x128x256xbf16> to vector<128x256xbf16>
    %cst = arith.constant dense<0.000000e+00> : vector<128x256xf32>
    %4 = tpu.matmul %0, %3, %cst {dimension_numbers = #tpu.dot_dimension_numbers<[1], [0], [0], [1], [0, 0, 1, 1], [], []>} : vector<128x128xbf16>, vector<128x256xbf16>, vector<128x256xf32> -> vector<128x256xf32>
    %5 = vector.extract_strided_slice %4 {offsets = [0, 0], sizes = [128, 128], strides = [1, 1]} : vector<128x256xf32> to vector<128x128xf32>
    %6 = arith.truncf %5 : vector<128x128xf32> to vector<128x128xbf16>
    %7 = vector.extract_strided_slice %4 {offsets = [0, 128], sizes = [128, 128], strides = [1, 1]} : vector<128x256xf32> to vector<128x128xf32>
    %cst_6 = arith.constant dense<0.000000e+00> : vector<128x128xf32>
    %8 = tpu.matmul %1, %6, %cst_6 {dimension_numbers = #tpu.dot_dimension_numbers<[1], [0], [0], [1], [0, 0, 1, 1], [], []>} : vector<128x128xbf16>, vector<128x128xbf16>, vector<128x128xf32> -> vector<128x128xf32>
    %9 = arith.addf %8, %7 : vector<128x128xf32>
    %c0_7 = arith.constant 0 : index
    %c0_8 = arith.constant 0 : index
    %c0_9 = arith.constant 0 : index
    %10 = vector.load %arg3[%c0_7, %c0_8, %c0_9] : memref<4x1x128xf32, #tpu.memory_space<vmem>>, vector<1x1x128xf32>
    %11 = vector.shape_cast %10 : vector<1x1x128xf32> to vector<1x128xf32>
    %12 = vector.broadcast %11 : vector<1x128xf32> to vector<128x128xf32>
    %13 = arith.addf %9, %12 : vector<128x128xf32>
    %cst_10 = arith.constant 0.000000e+00 : f32
    %14 = vector.broadcast %cst_10 : f32 to vector<128x128xf32>
    %15 = arith.maximumf %13, %14 : vector<128x128xf32>
    %16 = arith.truncf %15 : vector<128x128xf32> to vector<128x128xbf16>
    %c1 = arith.constant 1 : index
    %c0_11 = arith.constant 0 : index
    %c0_12 = arith.constant 0 : index
    %17 = vector.load %arg2[%c1, %c0_11, %c0_12] : memref<4x128x256xbf16, #tpu.memory_space<vmem>>, vector<1x128x256xbf16>
    %18 = vector.shape_cast %17 : vector<1x128x256xbf16> to vector<128x256xbf16>
    %cst_13 = arith.constant dense<0.000000e+00> : vector<128x256xf32>
    %19 = tpu.matmul %16, %18, %cst_13 {dimension_numbers = #tpu.dot_dimension_numbers<[1], [0], [0], [1], [0, 0, 1, 1], [], []>} : vector<128x128xbf16>, vector<128x256xbf16>, vector<128x256xf32> -> vector<128x256xf32>
    %20 = vector.extract_strided_slice %19 {offsets = [0, 0], sizes = [128, 128], strides = [1, 1]} : vector<128x256xf32> to vector<128x128xf32>
    %21 = arith.truncf %20 : vector<128x128xf32> to vector<128x128xbf16>
    %22 = vector.extract_strided_slice %19 {offsets = [0, 128], sizes = [128, 128], strides = [1, 1]} : vector<128x256xf32> to vector<128x128xf32>
    %cst_14 = arith.constant dense<0.000000e+00> : vector<128x128xf32>
    %23 = tpu.matmul %1, %21, %cst_14 {dimension_numbers = #tpu.dot_dimension_numbers<[1], [0], [0], [1], [0, 0, 1, 1], [], []>} : vector<128x128xbf16>, vector<128x128xbf16>, vector<128x128xf32> -> vector<128x128xf32>
    %24 = arith.addf %23, %22 : vector<128x128xf32>
    %c1_15 = arith.constant 1 : index
    %c0_16 = arith.constant 0 : index
    %c0_17 = arith.constant 0 : index
    %25 = vector.load %arg3[%c1_15, %c0_16, %c0_17] : memref<4x1x128xf32, #tpu.memory_space<vmem>>, vector<1x1x128xf32>
    %26 = vector.shape_cast %25 : vector<1x1x128xf32> to vector<1x128xf32>
    %27 = vector.broadcast %26 : vector<1x128xf32> to vector<128x128xf32>
    %28 = arith.addf %24, %27 : vector<128x128xf32>
    %cst_18 = arith.constant 0.000000e+00 : f32
    %29 = vector.broadcast %cst_18 : f32 to vector<128x128xf32>
    %30 = arith.maximumf %28, %29 : vector<128x128xf32>
    %31 = arith.truncf %30 : vector<128x128xf32> to vector<128x128xbf16>
    %c2 = arith.constant 2 : index
    %c0_19 = arith.constant 0 : index
    %c0_20 = arith.constant 0 : index
    %32 = vector.load %arg2[%c2, %c0_19, %c0_20] : memref<4x128x256xbf16, #tpu.memory_space<vmem>>, vector<1x128x256xbf16>
    %33 = vector.shape_cast %32 : vector<1x128x256xbf16> to vector<128x256xbf16>
    %cst_21 = arith.constant dense<0.000000e+00> : vector<128x256xf32>
    %34 = tpu.matmul %31, %33, %cst_21 {dimension_numbers = #tpu.dot_dimension_numbers<[1], [0], [0], [1], [0, 0, 1, 1], [], []>} : vector<128x128xbf16>, vector<128x256xbf16>, vector<128x256xf32> -> vector<128x256xf32>
    %35 = vector.extract_strided_slice %34 {offsets = [0, 0], sizes = [128, 128], strides = [1, 1]} : vector<128x256xf32> to vector<128x128xf32>
    %36 = arith.truncf %35 : vector<128x128xf32> to vector<128x128xbf16>
    %37 = vector.extract_strided_slice %34 {offsets = [0, 128], sizes = [128, 128], strides = [1, 1]} : vector<128x256xf32> to vector<128x128xf32>
    %cst_22 = arith.constant dense<0.000000e+00> : vector<128x128xf32>
    %38 = tpu.matmul %1, %36, %cst_22 {dimension_numbers = #tpu.dot_dimension_numbers<[1], [0], [0], [1], [0, 0, 1, 1], [], []>} : vector<128x128xbf16>, vector<128x128xbf16>, vector<128x128xf32> -> vector<128x128xf32>
    %39 = arith.addf %38, %37 : vector<128x128xf32>
    %c2_23 = arith.constant 2 : index
    %c0_24 = arith.constant 0 : index
    %c0_25 = arith.constant 0 : index
    %40 = vector.load %arg3[%c2_23, %c0_24, %c0_25] : memref<4x1x128xf32, #tpu.memory_space<vmem>>, vector<1x1x128xf32>
    %41 = vector.shape_cast %40 : vector<1x1x128xf32> to vector<1x128xf32>
    %42 = vector.broadcast %41 : vector<1x128xf32> to vector<128x128xf32>
    %43 = arith.addf %39, %42 : vector<128x128xf32>
    %cst_26 = arith.constant 0.000000e+00 : f32
    %44 = vector.broadcast %cst_26 : f32 to vector<128x128xf32>
    %45 = arith.maximumf %43, %44 : vector<128x128xf32>
    %46 = arith.truncf %45 : vector<128x128xf32> to vector<128x128xbf16>
    %c3 = arith.constant 3 : index
    %c0_27 = arith.constant 0 : index
    %c0_28 = arith.constant 0 : index
    %47 = vector.load %arg2[%c3, %c0_27, %c0_28] : memref<4x128x256xbf16, #tpu.memory_space<vmem>>, vector<1x128x256xbf16>
    %48 = vector.shape_cast %47 : vector<1x128x256xbf16> to vector<128x256xbf16>
    %cst_29 = arith.constant dense<0.000000e+00> : vector<128x256xf32>
    %49 = tpu.matmul %46, %48, %cst_29 {dimension_numbers = #tpu.dot_dimension_numbers<[1], [0], [0], [1], [0, 0, 1, 1], [], []>} : vector<128x128xbf16>, vector<128x256xbf16>, vector<128x256xf32> -> vector<128x256xf32>
    %50 = vector.extract_strided_slice %49 {offsets = [0, 0], sizes = [128, 128], strides = [1, 1]} : vector<128x256xf32> to vector<128x128xf32>
    %51 = arith.truncf %50 : vector<128x128xf32> to vector<128x128xbf16>
    %52 = vector.extract_strided_slice %49 {offsets = [0, 128], sizes = [128, 128], strides = [1, 1]} : vector<128x256xf32> to vector<128x128xf32>
    %cst_30 = arith.constant dense<0.000000e+00> : vector<128x128xf32>
    %53 = tpu.matmul %1, %51, %cst_30 {dimension_numbers = #tpu.dot_dimension_numbers<[1], [0], [0], [1], [0, 0, 1, 1], [], []>} : vector<128x128xbf16>, vector<128x128xbf16>, vector<128x128xf32> -> vector<128x128xf32>
    %54 = arith.addf %53, %52 : vector<128x128xf32>
    %c3_31 = arith.constant 3 : index
    %c0_32 = arith.constant 0 : index
    %c0_33 = arith.constant 0 : index
    %55 = vector.load %arg3[%c3_31, %c0_32, %c0_33] : memref<4x1x128xf32, #tpu.memory_space<vmem>>, vector<1x1x128xf32>
    %56 = vector.shape_cast %55 : vector<1x1x128xf32> to vector<1x128xf32>
    %57 = vector.broadcast %56 : vector<1x128xf32> to vector<128x128xf32>
    %58 = arith.addf %54, %57 : vector<128x128xf32>
    %59 = tpu.iota {dimensions = array<i32: 1>} : vector<128x128xi32>
    %c8_i32 = arith.constant 8 : i32
    %60 = vector.broadcast %c8_i32 : i32 to vector<128x128xi32>
    %61 = arith.cmpi slt, %59, %60 : vector<128x128xi32>
    %cst_34 = arith.constant -1.000000e+30 : f32
    %62 = vector.broadcast %cst_34 : f32 to vector<128x128xf32>
    %63 = arith.select %61, %58, %62 : vector<128x128xi1>, vector<128x128xf32>
    %cst_35 = arith.constant dense<0xFF800000> : vector<128xf32>
    %64 = vector.multi_reduction <maximumf>, %63, %cst_35 [1] : vector<128x128xf32> to vector<128xf32>
    %65 = vector.shape_cast %64 : vector<128xf32> to vector<128x1xf32>
    %66 = vector.broadcast %65 : vector<128x1xf32> to vector<128x128xf32>
    %67 = arith.subf %63, %66 : vector<128x128xf32>
    %68 = math.exp %67 : vector<128x128xf32>
    %cst_36 = arith.constant dense<0.000000e+00> : vector<128xf32>
    %69 = vector.multi_reduction <add>, %68, %cst_36 [1] : vector<128x128xf32> to vector<128xf32>
    %70 = vector.shape_cast %69 : vector<128xf32> to vector<128x1xf32>
    %71 = math.log %70 : vector<128x1xf32>
    %72 = vector.broadcast %71 : vector<128x1xf32> to vector<128x128xf32>
    %73 = arith.subf %67, %72 : vector<128x128xf32>
    %c0_37 = arith.constant 0 : index
    %c0_38 = arith.constant 0 : index
    %74 = vector.load %arg4[%c0_37, %c0_38] : memref<128x128xf32, #tpu.memory_space<vmem>>, vector<128x128xf32>
    tpu.vector_store %arg4[%c0_37, %c0_38], %73 {strides = array<i32>} : memref<128x128xf32, #tpu.memory_space<vmem>>, vector<128x128xf32>,
    return
  }
}

</mosaic_0001>

<bundles_post_ra>
// kernel: tpu_custom_call.1
= control target key start
LH: loop header
LB: loop body
LE: loop exit
PB: predicated region body
PF: predicated region fallthrough
CT: control target
= control target key end

     0   :  { %9 = vsyncpa [#allocation3], 0  ;;  %s2572_s0 = inlined_call_operand.hbm [shape: bf16[128,128], index: 0, kind: input, shape index: {}]   ;;  %s2573_s1 = inlined_call_operand.hbm [shape: bf16[128,128], index: 1, kind: input, shape index: {}]   ;;  %s2574_s2 = inlined_call_operand.hbm [shape: bf16[4,128,256], index: 2, kind: input, shape index: {}]   ;;  %s2575_s3 = inlined_call_operand.hbm [shape: f32[4,1,128], index: 3, kind: input, shape index: {}]   ;;  %s2576_s4 = inlined_call_operand.hbm [shape: f32[128,128], index: 4, kind: output, shape index: {}]  }
   0x1   :  { %10 = vsyncpa [#allocation6], 0 }
   0x2   :  { %11 = vsyncpa [#allocation9], 0 }
   0x3   :  { %12 = vsyncpa [#allocation4], 0  ;;  %s30_s17 = sshll.u32 %s2573_s1, 4  ;;  %s2202_s18 = smov [#allocation5]   ;;  %s31_s17 = int_to_ptr.hbm [resolvable:$true] %s30_s17 }
   0x4   :  { %s32_s19 = sshll.u32 %s2202_s18, 4  ;;  %s17_s22 = sshll.u32 %s2572_s0, 4  ;;  %s33_s19 = int_to_ptr.vmem [resolvable:$true] %s32_s19  ;;  %s18_s22 = int_to_ptr.hbm [resolvable:$true] %s17_s22 }
   0x5   :  { %s2203_s23 = smov 64   ;;  %s2204_s24 = smov 4  }
   0x6   :  { %38 = dma.hbm_to_vmem [thread:$0]  %s31_s17, 1024, %s33_s19, [#allocation6], %s2203_s23, %s2203_s23, %s2204_s24  }
   0x7   :  { %s2205_s25 = smov [#allocation2]   ;;  %s43_s29 = sshll.u32 %s2574_s2, 4  ;;  %s44_s29 = int_to_ptr.hbm [resolvable:$true] %s43_s29 }
   0x8   :  { %s19_s26 = sshll.u32 %s2205_s25, 4  ;;  %s2206_s1 = smov [#allocation7]   ;;  %s20_s26 = int_to_ptr.vmem [resolvable:$true] %s19_s26 }
   0x9   :  { %25 = dma.hbm_to_vmem [thread:$0]  %s18_s22, 1024, %s20_s26, [#allocation3], %s2203_s23, %s2203_s23, %s2204_s24  }
   0xa   :  { %s45_s30 = sshll.u32 %s2206_s1, 4  ;;  %s56_s0 = sshll.u32 %s2575_s3, 4  ;;  %s46_s30 = int_to_ptr.vmem [resolvable:$true] %s45_s30  ;;  %s57_s0 = int_to_ptr.hbm [resolvable:$true] %s56_s0 }
   0xb   :  { %s2207_s7 = smov 128   ;;  %s2208_s8 = smov 8  }
   0xc   :  { %51 = dma.hbm_to_vmem [thread:$0]  %s44_s29, 8192, %s46_s30, [#allocation6], %s2207_s7, %s2207_s7, %s2208_s8  }
   0xd   :  { %s2209_s9 = smov [#allocation8]   ;;  %s2210_s2 = smov 16  }
   0xe   :  { %s58_s10 = sshll.u32 %s2209_s9, 4  ;;  %s2211_s11 = smov 1   ;;  %s59_s10 = int_to_ptr.vmem [resolvable:$true] %s58_s10 }
   0xf   :  { %64 = dma.hbm_to_vmem [thread:$0]  %s57_s0, 64, %s59_s10, [#allocation9], %s2210_s2, %s2210_s2, %s2211_s11  }
  0x10   :  { %2194 = dma.done.wait [#allocation3], 1024  }
  0x11   :  { %2195 = vsyncadd [#allocation3], 4294966272 }
  0x12   :  { %2196 = dma.done.wait [#allocation6], 9216  }
  0x13   :  { %2197 = vsyncadd [#allocation6], 4294958080 }
  0x14   :  { %2198 = dma.done.wait [#allocation9], 64  }
  0x15   :  { %2199 = vsyncadd [#allocation9], 4294967232  ;;  %v1677_v0 = vld [vmem:[#allocation7 + $0x70] sm:$0xf]  ;;  %v1938_v1 = vld [vmem:[#allocation7 + $0x74] sm:$0xf0] }
  0x16   :  { %v1669_v2 = vld [vmem:[#allocation7 + $0x60] sm:$0xf]  ;;  %v1678_v3 = vor.u32 %v1938_v1, %v1677_v0  ;;  %v1936_v4 = vld [vmem:[#allocation7 + $0x64] sm:$0xf0]  ;;  %v1661_v6 = vld [vmem:[#allocation7 + $0x50] sm:$0xf] }
  0x17   :  { %v1670_v5 = vor.u32 %v1936_v4, %v1669_v2  ;;  %v1934_v7 = vld [vmem:[#allocation7 + $0x54] sm:$0xf0]  ;;  %v1653_v9 = vld [vmem:[#allocation7 + $0x40] sm:$0xf]  ;;  %v1932_v10 = vld [vmem:[#allocation7 + $0x44] sm:$0xf0] }
  0x18   :  { %257 = vmatpush.bf16.msra.mxu0 %v1678_v3  ;;  %v1662_v8 = vor.u32 %v1934_v7, %v1661_v6  ;;  %v1654_v11 = vor.u32 %v1932_v10, %v1653_v9  ;;  %v1645_v12 = vld [vmem:[#allocation7 + $0x30] sm:$0xf]  ;;  %v1930_v13 = vld [vmem:[#allocation7 + $0x34] sm:$0xf0]  ;;  %v1637_v15 = vld [vmem:[#allocation7 + $0x20] sm:$0xf] }
  0x19   :  { %v1646_v14 = vor.u32 %v1930_v13, %v1645_v12  ;;  %v1928_v16 = vld [vmem:[#allocation7 + $0x24] sm:$0xf0]  ;;  %v1629_v18 = vld [vmem:[#allocation7 + $0x10] sm:$0xf]  ;;  %v1926_v19 = vld [vmem:[#allocation7 + $0x14] sm:$0xf0] }
  0x1a   :  { %v1638_v17 = vor.u32 %v1928_v16, %v1637_v15  ;;  %v1630_v20 = vor.u32 %v1926_v19, %v1629_v18  ;;  %v1621_v21 = vld [vmem:[#allocation7] sm:$0xf]  ;;  %v1924_v22 = vld [vmem:[#allocation7 + $0x4] sm:$0xf0]  ;;  %v2259_v26 = vld [vmem:[#allocation2 + $0x10] sm:$0xff]  ;;  %s2212_s3 = smov [#allocation10]  }
  0x1b   :  { %v1622_v23 = vor.u32 %v1924_v22, %v1621_v21  ;;  %v2253_v24 = vld [vmem:[#allocation2] sm:$0xff]  ;;  %v2256_v25 = vld [vmem:[#allocation2 + $0x8] sm:$0xff]  ;;  %v2262_v27 = vld [vmem:[#allocation2 + $0x18] sm:$0xff]  ;;  %s1570_s12 = sshll.u32 %s2212_s3, 4  ;;  %s1572_s15 = sshll.u32 %s2576_s4, 4  ;;  %s1571_s12 = int_to_ptr.vmem [resolvable:$true] %s1570_s12  ;;  %s1573_s15 = int_to_ptr.hbm [resolvable:$true] %s1572_s15 }
  0x1c   :  { %258 = vmatpush.bf16.msra.mxu0 %v1670_v5  ;;  %v2265_v28 = vld [vmem:[#allocation2 + $0x20] sm:$0xff]  ;;  %v2268_v29 = vld [vmem:[#allocation2 + $0x28] sm:$0xff]  ;;  %v2271_v30 = vld [vmem:[#allocation2 + $0x30] sm:$0xff] }
  0x1d   :  { %v2274_v31 = vld [vmem:[#allocation2 + $0x38] sm:$0xff]  ;;  %v1937_v43 = vld [vmem:[#allocation7 + $0x74] sm:$0xf]  ;;  %v1935_v47 = vld [vmem:[#allocation7 + $0x64] sm:$0xf] }
  0x1e   :  { %v1679_v44 = vld [vmem:[#allocation7 + $0x78] sm:$0xf0]  ;;  %v1671_v48 = vld [vmem:[#allocation7 + $0x68] sm:$0xf0]  ;;  %v1933_v50 = vld [vmem:[#allocation7 + $0x54] sm:$0xf] }
  0x1f   :  { %v1682_v45 = vor.u32 %v1937_v43, %v1679_v44  ;;  %v1674_v49 = vor.u32 %v1935_v47, %v1671_v48  ;;  %v1663_v51 = vld [vmem:[#allocation7 + $0x58] sm:$0xf0]  ;;  %v1931_v54 = vld [vmem:[#allocation7 + $0x44] sm:$0xf]  ;;  %v1655_v55 = vld [vmem:[#allocation7 + $0x48] sm:$0xf0] }
  0x20   :  { %259 = vmatpush.bf16.msra.mxu0 %v1662_v8  ;;  %v1666_v52 = vor.u32 %v1933_v50, %v1663_v51  ;;  %v1658_v56 = vor.u32 %v1931_v54, %v1655_v55  ;;  %v1929_v57 = vld [vmem:[#allocation7 + $0x34] sm:$0xf]  ;;  %v1647_v58 = vld [vmem:[#allocation7 + $0x38] sm:$0xf0]  ;;  %v1927_v61 = vld [vmem:[#allocation7 + $0x24] sm:$0xf] }
  0x21   :  { %306 = vmatpush.bf16.msra.mxu1 %v1682_v45  ;;  %v1650_v59 = vor.u32 %v1929_v57, %v1647_v58  ;;  %v1639_v62 = vld [vmem:[#allocation7 + $0x28] sm:$0xf0]  ;;  %v1925_v0 = vld [vmem:[#allocation7 + $0x14] sm:$0xf]  ;;  %v1631_v1 = vld [vmem:[#allocation7 + $0x18] sm:$0xf0] }
  0x22   :  { %v1642_v63 = vor.u32 %v1927_v61, %v1639_v62  ;;  %v1634_v2 = vor.u32 %v1925_v0, %v1631_v1  ;;  %v1923_v4 = vld [vmem:[#allocation7 + $0x4] sm:$0xf]  ;;  %v1623_v5 = vld [vmem:[#allocation7 + $0x8] sm:$0xf0]  ;;  %v2293_v18 = vld [vmem:[#allocation5 + $0x10] sm:$0xff] }
  0x23   :  { %v1626_v6 = vor.u32 %v1923_v4, %v1623_v5  ;;  %v2285_v16 = vld [vmem:[#allocation5] sm:$0xff]  ;;  %v2297_v19 = vld [vmem:[#allocation5 + $0x18] sm:$0xff]  ;;  %v2305_v21 = vld [vmem:[#allocation5 + $0x28] sm:$0xff] }
  0x24   :  { %260 = vmatpush.bf16.msra.mxu0 %v1654_v11  ;;  %v1773_v22 = vld [vmem:[#allocation7 + $0xf0] sm:$0xf]  ;;  %v1751_v43 = vld [vmem:[#allocation7 + $0xc8] sm:$0xf0]  ;;  %v1946_v48 = vld [vmem:[#allocation7 + $0xb4] sm:$0xf0] }
  0x25   :  { %307 = vmatpush.bf16.msra.mxu1 %v1674_v49  ;;  %v2309_v45 = vld [vmem:[#allocation5 + $0x30] sm:$0xff]  ;;  %v1743_v51 = vld [vmem:[#allocation7 + $0xb8] sm:$0xf0]  ;;  %v1733_v54 = vld [vmem:[#allocation7 + $0xa0] sm:$0xf] }
  0x26   :  { %v1741_v47 = vld [vmem:[#allocation7 + $0xb0] sm:$0xf]  ;;  %v1945_v49 = vld [vmem:[#allocation7 + $0xb4] sm:$0xf]  ;;  %v1944_v55 = vld [vmem:[#allocation7 + $0xa4] sm:$0xf0] }
  0x27   :  { %v1742_v50 = vor.u32 %v1946_v48, %v1741_v47  ;;  %v1734_v57 = vor.u32 %v1944_v55, %v1733_v54  ;;  %v1735_v58 = vld [vmem:[#allocation7 + $0xa8] sm:$0xf0]  ;;  %v1942_v61 = vld [vmem:[#allocation7 + $0x94] sm:$0xf0]  ;;  %v1941_v62 = vld [vmem:[#allocation7 + $0x94] sm:$0xf] }
  0x28   :  { %261 = vmatpush.bf16.msra.mxu0 %v1646_v14  ;;  %v1727_v0 = vld [vmem:[#allocation7 + $0x98] sm:$0xf0]  ;;  %v1940_v4 = vld [vmem:[#allocation7 + $0x84] sm:$0xf0]  ;;  %v1939_v5 = vld [vmem:[#allocation7 + $0x84] sm:$0xf] }
  0x29   :  { %308 = vmatpush.bf16.msra.mxu1 %v1666_v52  ;;  %v1746_v52 = vor.u32 %v1945_v49, %v1743_v51  ;;  %v2312_v1 = vld [vmem:[#allocation5 + $0x38] sm:$0xff] }
  0x2c   :  { %262 = vmatpush.bf16.msra.mxu0 %v1638_v17  ;;  %v2289_v17 = vld [vmem:[#allocation5 + $0x8] sm:$0xff] }
  0x2d   :  { %309 = vmatpush.bf16.msra.mxu1 %v1658_v56  ;;  %v1943_v56 = vld [vmem:[#allocation7 + $0xa4] sm:$0xf] }
  0x30   :  { %263 = vmatpush.bf16.msra.mxu0 %v1630_v20  ;;  %v2301_v20 = vld [vmem:[#allocation5 + $0x20] sm:$0xff] }
  0x31   :  { %310 = vmatpush.bf16.msra.mxu1 %v1650_v59  ;;  %v1738_v59 = vor.u32 %v1943_v56, %v1735_v58 }
  0x34   :  { %264 = vmatpush.bf16.msra.mxu0 %v1622_v23  ;;  %v1954_v23 = vld [vmem:[#allocation7 + $0xf4] sm:$0xf0] }
  0x35   :  { %311 = vmatpush.bf16.msra.mxu1 %v1642_v63 }
  0x37   :  { %265 = vmatmul.bf16.vlgmr.msra.gmra.mxu0 %v2253_v24 }
  0x39   :  { %312 = vmatpush.bf16.msra.mxu1 %v1634_v2  ;;  %v1730_v2 = vor.u32 %v1941_v62, %v1727_v0 }
  0x3d   :  { %313 = vmatpush.bf16.msra.mxu1 %v1626_v6 }
  0x40   :  { %314 = vmatmul.bf16.vlgmr.msra.gmra.mxu1 %v2253_v24  ;;  %v1953_v24 = vld [vmem:[#allocation7 + $0xf4] sm:$0xf] }
  0x47   :  { %270 = vmatmul.bf16.gmra.mxu0 %v2256_v25 }
  0x50   :  { %319 = vmatmul.bf16.gmra.mxu1 %v2256_v25  ;;  %v1774_v25 = vor.u32 %v1954_v23, %v1773_v22 }
  0x52   :  { %601 = vmatpush.bf16.msra.mxu3 %v1774_v25 }
  0x57   :  { %275 = vmatmul.bf16.gmra.mxu0 %v2259_v26 }
  0x60   :  { %324 = vmatmul.bf16.gmra.mxu1 %v2259_v26  ;;  %v1775_v26 = vld [vmem:[#allocation7 + $0xf8] sm:$0xf0] }
  0x67   :  { %280 = vmatmul.bf16.gmra.mxu0 %v2262_v27 }
  0x70   :  { %329 = vmatmul.bf16.gmra.mxu1 %v2262_v27  ;;  %v1765_v27 = vld [vmem:[#allocation7 + $0xe0] sm:$0xf] }
  0x77   :  { %285 = vmatmul.bf16.gmra.mxu0 %v2265_v28 }
  0x80   :  { %334 = vmatmul.bf16.gmra.mxu1 %v2265_v28  ;;  %v1952_v28 = vld [vmem:[#allocation7 + $0xe4] sm:$0xf0] }
  0x87   :  { %290 = vmatmul.bf16.gmra.mxu0 %v2268_v29 }
  0x90   :  { %339 = vmatmul.bf16.gmra.mxu1 %v2268_v29  ;;  %v1778_v29 = vor.u32 %v1953_v24, %v1775_v26 }
  0x92   :  { %650 = vmatpush.bf16.msrb.mxu0 %v1778_v29 }
  0x97   :  { %295 = vmatmul.bf16.gmra.mxu0 %v2271_v30 }
  0xa0   :  { %344 = vmatmul.bf16.gmra.mxu1 %v2271_v30  ;;  %v1766_v30 = vor.u32 %v1952_v28, %v1765_v27 }
  0xa2   :  { %602 = vmatpush.bf16.msra.mxu3 %v1766_v30 }
  0xa7   :  { %300 = vmatmul.bf16.gmra.mxu0 %v2274_v31 }
  0xb0   :  { %349 = vmatmul.bf16.gmra.mxu1 %v2274_v31  ;;  %v1759_v31 = vld [vmem:[#allocation7 + $0xd8] sm:$0xf0] }
  0xb4   :  { %v2277_v32 = vpop.f32.mrf.mxu0 }
  0xbc   :  { %v2279_v33 = vpop.f32.mrf.mxu0 }
  0xbd   :  { %v355_v15 = vpack.c.bf16 %v2279_v33, %v2277_v32  ;;  %v1951_v32 = vld [vmem:[#allocation7 + $0xe4] sm:$0xf]  ;;  %v1767_v33 = vld [vmem:[#allocation7 + $0xe8] sm:$0xf0] }
  0xc4   :  { %v271_v34 = vpop.f32.mrf.mxu0 }
  0xcc   :  { %v273_v35 = vpop.f32.mrf.mxu0 }
  0xcd   :  { %v356_v14 = vpack.c.bf16 %v273_v35, %v271_v34  ;;  %v1770_v34 = vor.u32 %v1951_v32, %v1767_v33  ;;  %v1757_v35 = vld [vmem:[#allocation7 + $0xd0] sm:$0xf] }
  0xcf   :  { %651 = vmatpush.bf16.msrb.mxu0 %v1770_v34 }
  0xd4   :  { %v276_v36 = vpop.f32.mrf.mxu0 }
  0xdc   :  { %v278_v37 = vpop.f32.mrf.mxu0 }
  0xdd   :  { %v357_v13 = vpack.c.bf16 %v278_v37, %v276_v36  ;;  %v1950_v36 = vld [vmem:[#allocation7 + $0xd4] sm:$0xf0]  ;;  %v1949_v37 = vld [vmem:[#allocation7 + $0xd4] sm:$0xf] }
  0xe4   :  { %v281_v38 = vpop.f32.mrf.mxu0 }
  0xec   :  { %v283_v39 = vpop.f32.mrf.mxu0 }
  0xed   :  { %v358_v12 = vpack.c.bf16 %v283_v39, %v281_v38  ;;  %v1758_v38 = vor.u32 %v1950_v36, %v1757_v35  ;;  %v1762_v39 = vor.u32 %v1949_v37, %v1759_v31 }
  0xef   :  { %603 = vmatpush.bf16.msra.mxu3 %v1758_v38  ;;  %652 = vmatpush.bf16.msrb.mxu0 %v1762_v39 }
  0xf4   :  { %v286_v40 = vpop.f32.mrf.mxu0 }
  0xfc   :  { %v288_v41 = vpop.f32.mrf.mxu0 }
  0xfd   :  { %v359_v11 = vpack.c.bf16 %v288_v41, %v286_v40  ;;  %v1749_v40 = vld [vmem:[#allocation7 + $0xc0] sm:$0xf]  ;;  %v1948_v41 = vld [vmem:[#allocation7 + $0xc4] sm:$0xf0] }
  0xfe   :  { %v1750_v44 = vor.u32 %v1948_v41, %v1749_v40 }
 0x100   :  { %604 = vmatpush.bf16.msra.mxu3 %v1750_v44 }
 0x104   :  { %v291_v42 = vpop.f32.mrf.mxu0  ;;  %605 = vmatpush.bf16.msra.mxu3 %v1742_v50 }
 0x108   :  { %606 = vmatpush.bf16.msra.mxu3 %v1734_v57 }
 0x10c   :  { %v293_v46 = vpop.f32.mrf.mxu0 }
 0x10d   :  { %v360_v10 = vpack.c.bf16 %v293_v46, %v291_v42  ;;  %v1947_v42 = vld [vmem:[#allocation7 + $0xc4] sm:$0xf] }
 0x10e   :  { %v1754_v46 = vor.u32 %v1947_v42, %v1751_v43 }
 0x110   :  { %653 = vmatpush.bf16.msrb.mxu0 %v1754_v46 }
 0x114   :  { %v296_v53 = vpop.f32.mrf.mxu0  ;;  %654 = vmatpush.bf16.msrb.mxu0 %v1746_v52 }
 0x118   :  { %655 = vmatpush.bf16.msrb.mxu0 %v1738_v59 }
 0x11c   :  { %v298_v60 = vpop.f32.mrf.mxu0  ;;  %656 = vmatpush.bf16.msrb.mxu0 %v1730_v2 }
 0x11d   :  { %v361_v9 = vpack.c.bf16 %v298_v60, %v296_v53  ;;  %v315_v53 = vpop.f32.mrf.mxu1  ;;  %v1725_v60 = vld [vmem:[#allocation7 + $0x90] sm:$0xf] }
 0x11e   :  { %v1726_v63 = vor.u32 %v1942_v61, %v1725_v60 }
 0x120   :  { %607 = vmatpush.bf16.msra.mxu3 %v1726_v63 }
 0x124   :  { %v301_v3 = vpop.f32.mrf.mxu0 }
 0x125   :  { %v317_v6 = vpop.f32.mrf.mxu1 }
 0x12c   :  { %v303_v7 = vpop.f32.mrf.mxu0 }
 0x12d   :  { %v362_v8 = vpack.c.bf16 %v303_v7, %v301_v3  ;;  %v1717_v3 = vld [vmem:[#allocation7 + $0x80] sm:$0xf] }
 0x12e   :  { %v1718_v7 = vor.u32 %v1940_v4, %v1717_v3 }
 0x12f   :  { %411 = vmatpush.bf16.msra.mxu2 %v362_v8  ;;  %v1719_v8 = vld [vmem:[#allocation7 + $0x88] sm:$0xf0] }
 0x130   :  { %608 = vmatpush.bf16.msra.mxu3 %v1718_v7 }
 0x133   :  { %412 = vmatpush.bf16.msra.mxu2 %v361_v9  ;;  %v1722_v9 = vor.u32 %v1939_v5, %v1719_v8 }
 0x135   :  { %657 = vmatpush.bf16.msrb.mxu0 %v1722_v9 }
 0x137   :  { %413 = vmatpush.bf16.msra.mxu2 %v360_v10  ;;  %v320_v10 = vpop.f32.mrf.mxu1 }
 0x13b   :  { %414 = vmatpush.bf16.msra.mxu2 %v359_v11 }
 0x13f   :  { %415 = vmatpush.bf16.msra.mxu2 %v358_v12  ;;  %v322_v12 = vpop.f32.mrf.mxu1 }
 0x143   :  { %416 = vmatpush.bf16.msra.mxu2 %v357_v13 }
 0x147   :  { %417 = vmatpush.bf16.msra.mxu2 %v356_v14  ;;  %v2315_v14 = vld [vmem:[#allocation8] ss:$0 sm:$0xff]  ;;  %v325_v24 = vpop.f32.mrf.mxu1 }
 0x14b   :  { %418 = vmatpush.bf16.msra.mxu2 %v355_v15 }
 0x14e   :  { %419 = vmatmul.bf16.vlgmr.msra.gmra.mxu2 %v2285_v16 }
 0x14f   :  { %v327_v32 = vpop.f32.mrf.mxu1 }
 0x157   :  { %v330_v38 = vpop.f32.mrf.mxu1 }
 0x15e   :  { %424 = vmatmul.bf16.gmra.mxu2 %v2289_v17 }
 0x15f   :  { %v332_v43 = vpop.f32.mrf.mxu1 }
 0x167   :  { %v335_v52 = vpop.f32.mrf.mxu1 }
 0x16e   :  { %429 = vmatmul.bf16.gmra.mxu2 %v2293_v18 }
 0x16f   :  { %v337_v58 = vpop.f32.mrf.mxu1 }
 0x177   :  { %v340_v0 = vpop.f32.mrf.mxu1 }
 0x17e   :  { %434 = vmatmul.bf16.gmra.mxu2 %v2297_v19 }
 0x17f   :  { %v342_v9 = vpop.f32.mrf.mxu1 }
 0x18e   :  { %439 = vmatmul.bf16.gmra.mxu2 %v2301_v20 }
 0x19e   :  { %444 = vmatmul.bf16.gmra.mxu2 %v2305_v21 }
 0x1ae   :  { %449 = vmatmul.bf16.gmra.mxu2 %v2309_v45 }
 0x1be   :  { %454 = vmatmul.bf16.gmra.mxu2 %v2312_v1 }
 0x1d1   :  { %v420_v11 = vpop.f32.mrf.mxu2 }
 0x1d2   :  { %v421_v13 = vadd.f32 %v420_v11, %v315_v53 }
 0x1d4   :  { %v464_v22 = vadd.f32 %v2315_v14, %v421_v13 }
 0x1d6   :  { %v480_v26 = vmax.f32 %v464_v22, 0.0  ;;  %v345_v22 = vpop.f32.mrf.mxu1 }
 0x1d9   :  { %v422_v15 = vpop.f32.mrf.mxu2 }
 0x1da   :  { %v423_v23 = vadd.f32 %v422_v15, %v317_v6 }
 0x1dc   :  { %v465_v25 = vadd.f32 %v2315_v14, %v423_v23 }
 0x1de   :  { %v481_v27 = vmax.f32 %v465_v25, 0.0 }
 0x1e0   :  { %v496_v28 = vpack.c.bf16 %v481_v27, %v480_v26 }
 0x1e1   :  { %v425_v29 = vpop.f32.mrf.mxu2 }
 0x1e2   :  { %609 = vmatmul.bf16.vlgmr.msra.gmra.mxu3 %v496_v28  ;;  %658 = vmatmul.bf16.vlgmr.msrb.gmra.mxu0 %v496_v28  ;;  %v426_v33 = vadd.f32 %v425_v29, %v320_v10  ;;  %v347_v28 = vpop.f32.mrf.mxu1 }
 0x1e4   :  { %v466_v34 = vadd.f32 %v2315_v14, %v426_v33 }
 0x1e6   :  { %v482_v37 = vmax.f32 %v466_v34, 0.0 }
 0x1e9   :  { %v427_v30 = vpop.f32.mrf.mxu2 }
 0x1ea   :  { %v428_v35 = vadd.f32 %v427_v30, %v322_v12 }
 0x1ec   :  { %v467_v36 = vadd.f32 %v2315_v14, %v428_v35 }
 0x1ee   :  { %v483_v31 = vmax.f32 %v467_v36, 0.0 }
 0x1f0   :  { %v497_v39 = vpack.c.bf16 %v483_v31, %v482_v37  ;;  %v350_v37 = vpop.f32.mrf.mxu1 }
 0x1f1   :  { %v430_v40 = vpop.f32.mrf.mxu2 }
 0x1f2   :  { %614 = vmatmul.bf16.gmra.mxu3 %v497_v39  ;;  %663 = vmatmul.bf16.gmra.mxu0 %v497_v39  ;;  %v431_v41 = vadd.f32 %v430_v40, %v325_v24 }
 0x1f4   :  { %v468_v44 = vadd.f32 %v2315_v14, %v431_v41 }
 0x1f6   :  { %v484_v48 = vmax.f32 %v468_v44, 0.0 }
 0x1f8   :  { %v352_v40 = vpop.f32.mrf.mxu1 }
 0x1f9   :  { %v432_v42 = vpop.f32.mrf.mxu2 }
 0x1fa   :  { %v433_v46 = vadd.f32 %v432_v42, %v327_v32 }
 0x1fc   :  { %v469_v47 = vadd.f32 %v2315_v14, %v433_v46 }
 0x1fe   :  { %v485_v49 = vmax.f32 %v469_v47, 0.0 }
 0x200   :  { %v498_v50 = vpack.c.bf16 %v485_v49, %v484_v48 }
 0x201   :  { %v435_v51 = vpop.f32.mrf.mxu2 }
 0x202   :  { %619 = vmatmul.bf16.gmra.mxu3 %v498_v50  ;;  %668 = vmatmul.bf16.gmra.mxu0 %v498_v50  ;;  %v436_v53 = vadd.f32 %v435_v51, %v330_v38 }
 0x204   :  { %v470_v55 = vadd.f32 %v2315_v14, %v436_v53 }
 0x206   :  { %v486_v59 = vmax.f32 %v470_v55, 0.0 }
 0x209   :  { %v437_v54 = vpop.f32.mrf.mxu2 }
 0x20a   :  { %v438_v56 = vadd.f32 %v437_v54, %v332_v43 }
 0x20c   :  { %v471_v57 = vadd.f32 %v2315_v14, %v438_v56 }
 0x20e   :  { %v487_v60 = vmax.f32 %v471_v57, 0.0 }
 0x210   :  { %v499_v61 = vpack.c.bf16 %v487_v60, %v486_v59 }
 0x211   :  { %v440_v62 = vpop.f32.mrf.mxu2 }
 0x212   :  { %624 = vmatmul.bf16.gmra.mxu3 %v499_v61  ;;  %673 = vmatmul.bf16.gmra.mxu0 %v499_v61  ;;  %v441_v63 = vadd.f32 %v440_v62, %v335_v52 }
 0x214   :  { %v472_v3 = vadd.f32 %v2315_v14, %v441_v63 }
 0x216   :  { %v488_v6 = vmax.f32 %v472_v3, 0.0 }
 0x219   :  { %v442_v2 = vpop.f32.mrf.mxu2 }
 0x21a   :  { %v443_v4 = vadd.f32 %v442_v2, %v337_v58 }
 0x21c   :  { %v473_v5 = vadd.f32 %v2315_v14, %v443_v4 }
 0x21e   :  { %v489_v7 = vmax.f32 %v473_v5, 0.0 }
 0x220   :  { %v500_v8 = vpack.c.bf16 %v489_v7, %v488_v6 }
 0x221   :  { %v445_v10 = vpop.f32.mrf.mxu2 }
 0x222   :  { %629 = vmatmul.bf16.gmra.mxu3 %v500_v8  ;;  %678 = vmatmul.bf16.gmra.mxu0 %v500_v8  ;;  %v446_v11 = vadd.f32 %v445_v10, %v340_v0  ;;  %v1970_v10 = vld [vmem:[#allocation7 + $0x174] sm:$0xf0] }
 0x224   :  { %v474_v13 = vadd.f32 %v2315_v14, %v446_v11  ;;  %v1969_v11 = vld [vmem:[#allocation7 + $0x174] sm:$0xf] }
 0x226   :  { %v490_v24 = vmax.f32 %v474_v13, 0.0  ;;  %v1839_v13 = vld [vmem:[#allocation7 + $0x178] sm:$0xf0] }
 0x229   :  { %v447_v12 = vpop.f32.mrf.mxu2 }
 0x22a   :  { %v448_v15 = vadd.f32 %v447_v12, %v342_v9  ;;  %v1837_v9 = vld [vmem:[#allocation7 + $0x170] sm:$0xf] }
 0x22b   :  { %v1838_v12 = vor.u32 %v1970_v10, %v1837_v9 }
 0x22c   :  { %v475_v23 = vadd.f32 %v2315_v14, %v448_v15  ;;  %v1842_v15 = vor.u32 %v1969_v11, %v1839_v13 }
 0x22d   :  { %898 = vmatpush.bf16.msrb.mxu2 %v1838_v12 }
 0x22e   :  { %v491_v25 = vmax.f32 %v475_v23, 0.0  ;;  %947 = vmatpush.bf16.msrb.mxu3 %v1842_v15  ;;  %v1968_v23 = vld [vmem:[#allocation7 + $0x164] sm:$0xf0] }
 0x230   :  { %v501_v26 = vpack.c.bf16 %v491_v25, %v490_v24  ;;  %v1967_v24 = vld [vmem:[#allocation7 + $0x164] sm:$0xf] }
 0x231   :  { %v450_v27 = vpop.f32.mrf.mxu2 }
 0x232   :  { %634 = vmatmul.bf16.gmra.mxu3 %v501_v26  ;;  %683 = vmatmul.bf16.gmra.mxu0 %v501_v26  ;;  %v451_v29 = vadd.f32 %v450_v27, %v345_v22  ;;  %v1829_v22 = vld [vmem:[#allocation7 + $0x160] sm:$0xf]  ;;  %v1831_v26 = vld [vmem:[#allocation7 + $0x168] sm:$0xf0]  ;;  %v1821_v27 = vld [vmem:[#allocation7 + $0x150] sm:$0xf] }
 0x233   :  { %v1830_v25 = vor.u32 %v1968_v23, %v1829_v22 }
 0x234   :  { %v476_v33 = vadd.f32 %v2315_v14, %v451_v29  ;;  %v1834_v29 = vor.u32 %v1967_v24, %v1831_v26 }
 0x235   :  { %899 = vmatpush.bf16.msrb.mxu2 %v1830_v25 }
 0x236   :  { %v492_v35 = vmax.f32 %v476_v33, 0.0  ;;  %v1823_v33 = vld [vmem:[#allocation7 + $0x158] sm:$0xf0]  ;;  %948 = vmatpush.bf16.msrb.mxu3 %v1834_v29 }
 0x239   :  { %v452_v32 = vpop.f32.mrf.mxu2 }
 0x23a   :  { %v453_v30 = vadd.f32 %v452_v32, %v347_v28  ;;  %v1966_v28 = vld [vmem:[#allocation7 + $0x154] sm:$0xf0]  ;;  %v1965_v32 = vld [vmem:[#allocation7 + $0x154] sm:$0xf] }
 0x23c   :  { %v477_v34 = vadd.f32 %v2315_v14, %v453_v30  ;;  %v1822_v30 = vor.u32 %v1966_v28, %v1821_v27 }
 0x23e   :  { %v493_v36 = vmax.f32 %v477_v34, 0.0  ;;  %v1826_v34 = vor.u32 %v1965_v32, %v1823_v33  ;;  %900 = vmatpush.bf16.msrb.mxu2 %v1822_v30 }
 0x240   :  { %v502_v31 = vpack.c.bf16 %v493_v36, %v492_v35  ;;  %v1813_v35 = vld [vmem:[#allocation7 + $0x140] sm:$0xf]  ;;  %v1964_v36 = vld [vmem:[#allocation7 + $0x144] sm:$0xf0]  ;;  %949 = vmatpush.bf16.msrb.mxu3 %v1826_v34 }
 0x241   :  { %v455_v38 = vpop.f32.mrf.mxu2 }
 0x242   :  { %639 = vmatmul.bf16.gmra.mxu3 %v502_v31  ;;  %688 = vmatmul.bf16.gmra.mxu0 %v502_v31  ;;  %v456_v39 = vadd.f32 %v455_v38, %v350_v37  ;;  %v1963_v37 = vld [vmem:[#allocation7 + $0x144] sm:$0xf]  ;;  %v1815_v31 = vld [vmem:[#allocation7 + $0x148] sm:$0xf0]  ;;  %v1814_v38 = vor.u32 %v1964_v36, %v1813_v35 }
 0x244   :  { %v478_v42 = vadd.f32 %v2315_v14, %v456_v39  ;;  %v1818_v39 = vor.u32 %v1963_v37, %v1815_v31  ;;  %901 = vmatpush.bf16.msrb.mxu2 %v1814_v38 }
 0x246   :  { %v494_v46 = vmax.f32 %v478_v42, 0.0  ;;  %950 = vmatpush.bf16.msrb.mxu3 %v1818_v39  ;;  %v1961_v42 = vld [vmem:[#allocation7 + $0x134] sm:$0xf] }
 0x249   :  { %v457_v41 = vpop.f32.mrf.mxu2 }
 0x24a   :  { %v458_v43 = vadd.f32 %v457_v41, %v352_v40  ;;  %v1805_v40 = vld [vmem:[#allocation7 + $0x130] sm:$0xf]  ;;  %v1962_v41 = vld [vmem:[#allocation7 + $0x134] sm:$0xf0] }
 0x24c   :  { %v479_v44 = vadd.f32 %v2315_v14, %v458_v43  ;;  %v1806_v43 = vor.u32 %v1962_v41, %v1805_v40 }
 0x24e   :  { %v495_v47 = vmax.f32 %v479_v44, 0.0  ;;  %v1807_v44 = vld [vmem:[#allocation7 + $0x138] sm:$0xf0]  ;;  %902 = vmatpush.bf16.msrb.mxu2 %v1806_v43 }
 0x250   :  { %v503_v48 = vpack.c.bf16 %v495_v47, %v494_v46  ;;  %v1810_v46 = vor.u32 %v1961_v42, %v1807_v44 }
 0x252   :  { %644 = vmatmul.bf16.gmra.mxu3 %v503_v48  ;;  %693 = vmatmul.bf16.gmra.mxu0 %v503_v48  ;;  %v1797_v48 = vld [vmem:[#allocation7 + $0x120] sm:$0xf] }
 0x253   :  { %951 = vmatpush.bf16.msrb.mxu3 %v1810_v46 }
 0x25f   :  { %v659_v47 = vpop.f32.mrf.mxu0 }
 0x265   :  { %v610_v49 = vpop.f32.mrf.mxu3 }
 0x26d   :  { %v612_v50 = vpop.f32.mrf.mxu3 }
 0x26e   :  { %v699_v8 = vpack.c.bf16 %v612_v50, %v610_v49  ;;  %v1960_v49 = vld [vmem:[#allocation7 + $0x124] sm:$0xf0]  ;;  %v1959_v50 = vld [vmem:[#allocation7 + $0x124] sm:$0xf] }
 0x275   :  { %v615_v51 = vpop.f32.mrf.mxu3 }
 0x27d   :  { %v617_v52 = vpop.f32.mrf.mxu3 }
 0x27e   :  { %v700_v7 = vpack.c.bf16 %v617_v52, %v615_v51  ;;  %v1798_v51 = vor.u32 %v1960_v49, %v1797_v48  ;;  %v1799_v52 = vld [vmem:[#allocation7 + $0x128] sm:$0xf0] }
 0x280   :  { %903 = vmatpush.bf16.msrb.mxu2 %v1798_v51 }
 0x285   :  { %v620_v53 = vpop.f32.mrf.mxu3 }
 0x28d   :  { %v622_v54 = vpop.f32.mrf.mxu3 }
 0x28e   :  { %v701_v6 = vpack.c.bf16 %v622_v54, %v620_v53  ;;  %v1802_v53 = vor.u32 %v1959_v50, %v1799_v52  ;;  %v1789_v54 = vld [vmem:[#allocation7 + $0x110] sm:$0xf] }
 0x290   :  { %952 = vmatpush.bf16.msrb.mxu3 %v1802_v53 }
 0x295   :  { %v625_v55 = vpop.f32.mrf.mxu3 }
 0x29d   :  { %v627_v56 = vpop.f32.mrf.mxu3 }
 0x29e   :  { %v702_v5 = vpack.c.bf16 %v627_v56, %v625_v55  ;;  %v1958_v55 = vld [vmem:[#allocation7 + $0x114] sm:$0xf0]  ;;  %v1957_v56 = vld [vmem:[#allocation7 + $0x114] sm:$0xf] }
 0x2a5   :  { %v630_v57 = vpop.f32.mrf.mxu3 }
 0x2ad   :  { %v632_v58 = vpop.f32.mrf.mxu3 }
 0x2ae   :  { %v703_v4 = vpack.c.bf16 %v632_v58, %v630_v57  ;;  %v1790_v57 = vor.u32 %v1958_v55, %v1789_v54  ;;  %v1791_v58 = vld [vmem:[#allocation7 + $0x118] sm:$0xf0] }
 0x2b0   :  { %904 = vmatpush.bf16.msrb.mxu2 %v1790_v57 }
 0x2b5   :  { %v635_v59 = vpop.f32.mrf.mxu3 }
 0x2bd   :  { %v637_v60 = vpop.f32.mrf.mxu3 }
 0x2be   :  { %v704_v3 = vpack.c.bf16 %v637_v60, %v635_v59  ;;  %v1794_v59 = vor.u32 %v1957_v56, %v1791_v58  ;;  %v1781_v60 = vld [vmem:[#allocation7 + $0x100] sm:$0xf] }
 0x2c0   :  { %953 = vmatpush.bf16.msrb.mxu3 %v1794_v59 }
 0x2c5   :  { %v640_v61 = vpop.f32.mrf.mxu3 }
 0x2cd   :  { %v642_v62 = vpop.f32.mrf.mxu3 }
 0x2ce   :  { %v705_v2 = vpack.c.bf16 %v642_v62, %v640_v61  ;;  %v1956_v61 = vld [vmem:[#allocation7 + $0x104] sm:$0xf0]  ;;  %v1955_v62 = vld [vmem:[#allocation7 + $0x104] sm:$0xf] }
 0x2d5   :  { %v645_v14 = vpop.f32.mrf.mxu3 }
 0x2dd   :  { %v647_v63 = vpop.f32.mrf.mxu3 }
 0x2de   :  { %v706_v0 = vpack.c.bf16 %v647_v63, %v645_v14  ;;  %v661_v14 = vpop.f32.mrf.mxu0  ;;  %v1782_v63 = vor.u32 %v1956_v61, %v1781_v60 }
 0x2e0   :  { %707 = vmatpush.bf16.msrb.mxu1 %v706_v0  ;;  %v1783_v0 = vld [vmem:[#allocation7 + $0x108] sm:$0xf0]  ;;  %905 = vmatpush.bf16.msrb.mxu2 %v1782_v63 }
 0x2e4   :  { %708 = vmatpush.bf16.msrb.mxu1 %v705_v2  ;;  %v1786_v2 = vor.u32 %v1955_v62, %v1783_v0 }
 0x2e6   :  { %954 = vmatpush.bf16.msrb.mxu3 %v1786_v2 }
 0x2e8   :  { %709 = vmatpush.bf16.msrb.mxu1 %v704_v3  ;;  %v664_v3 = vpop.f32.mrf.mxu0 }
 0x2ec   :  { %710 = vmatpush.bf16.msrb.mxu1 %v703_v4 }
 0x2f0   :  { %711 = vmatpush.bf16.msrb.mxu1 %v702_v5  ;;  %v666_v4 = vpop.f32.mrf.mxu0 }
 0x2f4   :  { %712 = vmatpush.bf16.msrb.mxu1 %v701_v6 }
 0x2f8   :  { %713 = vmatpush.bf16.msrb.mxu1 %v700_v7  ;;  %v2341_v7 = vld [vmem:[#allocation8 + $0x1] ss:$0 sm:$0xff]  ;;  %v669_v11 = vpop.f32.mrf.mxu0 }
 0x2fc   :  { %714 = vmatpush.bf16.msrb.mxu1 %v699_v8 }
 0x2ff   :  { %715 = vmatmul.bf16.vlgmr.msrb.gmra.mxu1 %v2285_v16 }
 0x300   :  { %v671_v24 = vpop.f32.mrf.mxu0 }
 0x308   :  { %v674_v30 = vpop.f32.mrf.mxu0 }
 0x30f   :  { %720 = vmatmul.bf16.gmra.mxu1 %v2289_v17 }
 0x310   :  { %v676_v37 = vpop.f32.mrf.mxu0 }
 0x318   :  { %v679_v46 = vpop.f32.mrf.mxu0 }
 0x31f   :  { %725 = vmatmul.bf16.gmra.mxu1 %v2293_v18 }
 0x320   :  { %v681_v52 = vpop.f32.mrf.mxu0 }
 0x328   :  { %v684_v58 = vpop.f32.mrf.mxu0 }
 0x32f   :  { %730 = vmatmul.bf16.gmra.mxu1 %v2297_v19 }
 0x330   :  { %v686_v2 = vpop.f32.mrf.mxu0 }
 0x33f   :  { %735 = vmatmul.bf16.gmra.mxu1 %v2301_v20 }
 0x34f   :  { %740 = vmatmul.bf16.gmra.mxu1 %v2305_v21 }
 0x35f   :  { %745 = vmatmul.bf16.gmra.mxu1 %v2309_v45 }
 0x36f   :  { %750 = vmatmul.bf16.gmra.mxu1 %v2312_v1 }
 0x37c   :  { %v716_v5 = vpop.f32.mrf.mxu1 }
 0x37d   :  { %v717_v6 = vadd.f32 %v716_v5, %v659_v47 }
 0x37f   :  { %v761_v9 = vadd.f32 %v2341_v7, %v717_v6 }
 0x381   :  { %v777_v13 = vmax.f32 %v761_v9, 0.0  ;;  %v689_v9 = vpop.f32.mrf.mxu0 }
 0x384   :  { %v718_v8 = vpop.f32.mrf.mxu1 }
 0x385   :  { %v719_v10 = vadd.f32 %v718_v8, %v661_v14 }
 0x387   :  { %v762_v12 = vadd.f32 %v2341_v7, %v719_v10 }
 0x389   :  { %v778_v15 = vmax.f32 %v762_v12, 0.0 }
 0x38b   :  { %v793_v22 = vpack.c.bf16 %v778_v15, %v777_v13 }
 0x38c   :  { %v721_v23 = vpop.f32.mrf.mxu1 }
 0x38d   :  { %906 = vmatmul.bf16.vlgmr.msrb.gmra.mxu2 %v793_v22  ;;  %955 = vmatmul.bf16.vlgmr.msrb.gmra.mxu3 %v793_v22  ;;  %v722_v25 = vadd.f32 %v721_v23, %v664_v3  ;;  %v691_v22 = vpop.f32.mrf.mxu0 }
 0x38f   :  { %v763_v27 = vadd.f32 %v2341_v7, %v722_v25 }
 0x391   :  { %v779_v32 = vmax.f32 %v763_v27, 0.0 }
 0x394   :  { %v723_v26 = vpop.f32.mrf.mxu1 }
 0x395   :  { %v724_v28 = vadd.f32 %v723_v26, %v666_v4 }
 0x397   :  { %v764_v29 = vadd.f32 %v2341_v7, %v724_v28 }
 0x399   :  { %v780_v33 = vmax.f32 %v764_v29, 0.0 }
 0x39b   :  { %v794_v34 = vpack.c.bf16 %v780_v33, %v779_v32  ;;  %v694_v32 = vpop.f32.mrf.mxu0 }
 0x39c   :  { %v726_v35 = vpop.f32.mrf.mxu1 }
 0x39d   :  { %911 = vmatmul.bf16.gmra.mxu2 %v794_v34  ;;  %960 = vmatmul.bf16.gmra.mxu3 %v794_v34  ;;  %v727_v36 = vadd.f32 %v726_v35, %v669_v11 }
 0x39f   :  { %v765_v38 = vadd.f32 %v2341_v7, %v727_v36 }
 0x3a1   :  { %v781_v41 = vmax.f32 %v765_v38, 0.0 }
 0x3a3   :  { %v696_v35 = vpop.f32.mrf.mxu0 }
 0x3a4   :  { %v728_v31 = vpop.f32.mrf.mxu1 }
 0x3a5   :  { %v729_v39 = vadd.f32 %v728_v31, %v671_v24 }
 0x3a7   :  { %v766_v40 = vadd.f32 %v2341_v7, %v729_v39 }
 0x3a9   :  { %v782_v42 = vmax.f32 %v766_v40, 0.0 }
 0x3ab   :  { %v795_v43 = vpack.c.bf16 %v782_v42, %v781_v41 }
 0x3ac   :  { %v731_v44 = vpop.f32.mrf.mxu1 }
 0x3ad   :  { %916 = vmatmul.bf16.gmra.mxu2 %v795_v43  ;;  %965 = vmatmul.bf16.gmra.mxu3 %v795_v43  ;;  %v732_v47 = vadd.f32 %v731_v44, %v674_v30 }
 0x3af   :  { %v767_v49 = vadd.f32 %v2341_v7, %v732_v47 }
 0x3b1   :  { %v783_v53 = vmax.f32 %v767_v49, 0.0 }
 0x3b4   :  { %v733_v48 = vpop.f32.mrf.mxu1 }
 0x3b5   :  { %v734_v50 = vadd.f32 %v733_v48, %v676_v37 }
 0x3b7   :  { %v768_v51 = vadd.f32 %v2341_v7, %v734_v50 }
 0x3b9   :  { %v784_v54 = vmax.f32 %v768_v51, 0.0 }
 0x3bb   :  { %v796_v55 = vpack.c.bf16 %v784_v54, %v783_v53 }
 0x3bc   :  { %v736_v56 = vpop.f32.mrf.mxu1 }
 0x3bd   :  { %921 = vmatmul.bf16.gmra.mxu2 %v796_v55  ;;  %970 = vmatmul.bf16.gmra.mxu3 %v796_v55  ;;  %v737_v57 = vadd.f32 %v736_v56, %v679_v46 }
 0x3bf   :  { %v769_v60 = vadd.f32 %v2341_v7, %v737_v57 }
 0x3c1   :  { %v785_v14 = vmax.f32 %v769_v60, 0.0 }
 0x3c4   :  { %v738_v59 = vpop.f32.mrf.mxu1 }
 0x3c5   :  { %v739_v61 = vadd.f32 %v738_v59, %v681_v52 }
 0x3c7   :  { %v770_v62 = vadd.f32 %v2341_v7, %v739_v61 }
 0x3c9   :  { %v786_v63 = vmax.f32 %v770_v62, 0.0 }
 0x3cb   :  { %v797_v0 = vpack.c.bf16 %v786_v63, %v785_v14 }
 0x3cc   :  { %v741_v3 = vpop.f32.mrf.mxu1 }
 0x3cd   :  { %926 = vmatmul.bf16.gmra.mxu2 %v797_v0  ;;  %975 = vmatmul.bf16.gmra.mxu3 %v797_v0  ;;  %v742_v4 = vadd.f32 %v741_v3, %v684_v58  ;;  %v1986_v3 = vld [vmem:[#allocation7 + $0x1f4] sm:$0xf0] }
 0x3cf   :  { %v771_v6 = vadd.f32 %v2341_v7, %v742_v4  ;;  %v1985_v4 = vld [vmem:[#allocation7 + $0x1f4] sm:$0xf] }
 0x3d1   :  { %v787_v11 = vmax.f32 %v771_v6, 0.0  ;;  %v1903_v6 = vld [vmem:[#allocation7 + $0x1f8] sm:$0xf0] }
 0x3d4   :  { %v743_v5 = vpop.f32.mrf.mxu1 }
 0x3d5   :  { %v744_v8 = vadd.f32 %v743_v5, %v686_v2  ;;  %v1901_v2 = vld [vmem:[#allocation7 + $0x1f0] sm:$0xf] }
 0x3d6   :  { %v1902_v5 = vor.u32 %v1986_v3, %v1901_v2 }
 0x3d7   :  { %v772_v10 = vadd.f32 %v2341_v7, %v744_v8  ;;  %v1906_v8 = vor.u32 %v1985_v4, %v1903_v6 }
 0x3d8   :  { %1195 = vmatpush.bf16.msra.mxu1 %v1902_v5 }
 0x3d9   :  { %v788_v12 = vmax.f32 %v772_v10, 0.0  ;;  %1244 = vmatpush.bf16.msra.mxu2 %v1906_v8  ;;  %v1983_v10 = vld [vmem:[#allocation7 + $0x1e4] sm:$0xf] }
 0x3db   :  { %v798_v13 = vpack.c.bf16 %v788_v12, %v787_v11  ;;  %v1895_v11 = vld [vmem:[#allocation7 + $0x1e8] sm:$0xf0]  ;;  %v1982_v12 = vld [vmem:[#allocation7 + $0x1d4] sm:$0xf0] }
 0x3dc   :  { %v746_v15 = vpop.f32.mrf.mxu1 }
 0x3dd   :  { %931 = vmatmul.bf16.gmra.mxu2 %v798_v13  ;;  %980 = vmatmul.bf16.gmra.mxu3 %v798_v13  ;;  %v747_v23 = vadd.f32 %v746_v15, %v689_v9  ;;  %v1893_v9 = vld [vmem:[#allocation7 + $0x1e0] sm:$0xf]  ;;  %v1981_v13 = vld [vmem:[#allocation7 + $0x1d4] sm:$0xf] }
 0x3df   :  { %v773_v25 = vadd.f32 %v2341_v7, %v747_v23  ;;  %v1877_v23 = vld [vmem:[#allocation7 + $0x1c0] sm:$0xf] }
 0x3e1   :  { %v789_v28 = vmax.f32 %v773_v25, 0.0  ;;  %v1979_v25 = vld [vmem:[#allocation7 + $0x1c4] sm:$0xf] }
 0x3e4   :  { %v748_v24 = vpop.f32.mrf.mxu1 }
 0x3e5   :  { %v749_v26 = vadd.f32 %v748_v24, %v691_v22  ;;  %v1980_v24 = vld [vmem:[#allocation7 + $0x1c4] sm:$0xf0] }
 0x3e7   :  { %v774_v27 = vadd.f32 %v2341_v7, %v749_v26  ;;  %v1879_v26 = vld [vmem:[#allocation7 + $0x1c8] sm:$0xf0] }
 0x3e9   :  { %v790_v29 = vmax.f32 %v774_v27, 0.0  ;;  %v1882_v27 = vor.u32 %v1979_v25, %v1879_v26 }
 0x3eb   :  { %v799_v33 = vpack.c.bf16 %v790_v29, %v789_v28  ;;  %v1869_v28 = vld [vmem:[#allocation7 + $0x1b0] sm:$0xf]  ;;  %v1978_v29 = vld [vmem:[#allocation7 + $0x1b4] sm:$0xf0] }
 0x3ec   :  { %v751_v30 = vpop.f32.mrf.mxu1 }
 0x3ed   :  { %936 = vmatmul.bf16.gmra.mxu2 %v799_v33  ;;  %985 = vmatmul.bf16.gmra.mxu3 %v799_v33  ;;  %v752_v34 = vadd.f32 %v751_v30, %v694_v32  ;;  %v1977_v32 = vld [vmem:[#allocation7 + $0x1b4] sm:$0xf]  ;;  %v1870_v33 = vor.u32 %v1978_v29, %v1869_v28  ;;  %v1871_v30 = vld [vmem:[#allocation7 + $0x1b8] sm:$0xf0] }
 0x3ef   :  { %v775_v37 = vadd.f32 %v2341_v7, %v752_v34  ;;  %v1874_v34 = vor.u32 %v1977_v32, %v1871_v30 }
 0x3f1   :  { %v791_v39 = vmax.f32 %v775_v37, 0.0  ;;  %v1976_v37 = vld [vmem:[#allocation7 + $0x1a4] sm:$0xf0] }
 0x3f4   :  { %v753_v36 = vpop.f32.mrf.mxu1 }
 0x3f5   :  { %v754_v31 = vadd.f32 %v753_v36, %v696_v35  ;;  %v1861_v36 = vld [vmem:[#allocation7 + $0x1a0] sm:$0xf] }
 0x3f7   :  { %v776_v38 = vadd.f32 %v2341_v7, %v754_v31  ;;  %v1975_v31 = vld [vmem:[#allocation7 + $0x1a4] sm:$0xf] }
 0x3f9   :  { %v792_v40 = vmax.f32 %v776_v38, 0.0  ;;  %v1862_v38 = vor.u32 %v1976_v37, %v1861_v36 }
 0x3fb   :  { %v800_v41 = vpack.c.bf16 %v792_v40, %v791_v39  ;;  %v1863_v39 = vld [vmem:[#allocation7 + $0x1a8] sm:$0xf0] }
 0x3fc   :  { %v1866_v40 = vor.u32 %v1975_v31, %v1863_v39 }
 0x3fd   :  { %941 = vmatmul.bf16.gmra.mxu2 %v800_v41  ;;  %990 = vmatmul.bf16.gmra.mxu3 %v800_v41  ;;  %v1853_v41 = vld [vmem:[#allocation7 + $0x190] sm:$0xf] }
 0x410   :  { %v907_v42 = vpop.f32.mrf.mxu2  ;;  %v956_v35 = vpop.f32.mrf.mxu3 }
 0x418   :  { %v909_v43 = vpop.f32.mrf.mxu2 }
 0x419   :  { %v996_v0 = vpack.c.bf16 %v909_v43, %v907_v42  ;;  %v1974_v42 = vld [vmem:[#allocation7 + $0x194] sm:$0xf0]  ;;  %v1973_v43 = vld [vmem:[#allocation7 + $0x194] sm:$0xf] }
 0x420   :  { %v912_v44 = vpop.f32.mrf.mxu2 }
 0x428   :  { %v914_v46 = vpop.f32.mrf.mxu2 }
 0x429   :  { %v997_v63 = vpack.c.bf16 %v914_v46, %v912_v44  ;;  %v1854_v44 = vor.u32 %v1974_v42, %v1853_v41  ;;  %v1855_v46 = vld [vmem:[#allocation7 + $0x198] sm:$0xf0] }
 0x430   :  { %v917_v47 = vpop.f32.mrf.mxu2 }
 0x438   :  { %v919_v48 = vpop.f32.mrf.mxu2 }
 0x439   :  { %v998_v14 = vpack.c.bf16 %v919_v48, %v917_v47  ;;  %v1858_v47 = vor.u32 %v1973_v43, %v1855_v46  ;;  %v1845_v48 = vld [vmem:[#allocation7 + $0x180] sm:$0xf] }
 0x440   :  { %v922_v49 = vpop.f32.mrf.mxu2 }
 0x448   :  { %v924_v50 = vpop.f32.mrf.mxu2 }
 0x449   :  { %v999_v62 = vpack.c.bf16 %v924_v50, %v922_v49  ;;  %v1972_v49 = vld [vmem:[#allocation7 + $0x184] sm:$0xf0]  ;;  %v958_v50 = vpop.f32.mrf.mxu3 }
 0x450   :  { %v927_v51 = vpop.f32.mrf.mxu2 }
 0x458   :  { %v929_v52 = vpop.f32.mrf.mxu2 }
 0x459   :  { %v1000_v61 = vpack.c.bf16 %v929_v52, %v927_v51  ;;  %v1846_v51 = vor.u32 %v1972_v49, %v1845_v48  ;;  %v1847_v52 = vld [vmem:[#allocation7 + $0x188] sm:$0xf0] }
 0x460   :  { %v932_v53 = vpop.f32.mrf.mxu2 }
 0x468   :  { %v934_v54 = vpop.f32.mrf.mxu2 }
 0x469   :  { %v1001_v60 = vpack.c.bf16 %v934_v54, %v932_v53  ;;  %v961_v54 = vpop.f32.mrf.mxu3 }
 0x470   :  { %v937_v55 = vpop.f32.mrf.mxu2 }
 0x478   :  { %v939_v56 = vpop.f32.mrf.mxu2 }
 0x479   :  { %v1002_v59 = vpack.c.bf16 %v939_v56, %v937_v55  ;;  %v963_v55 = vpop.f32.mrf.mxu3 }
 0x480   :  { %v942_v7 = vpop.f32.mrf.mxu2 }
 0x488   :  { %v944_v57 = vpop.f32.mrf.mxu2 }
 0x489   :  { %v1003_v58 = vpack.c.bf16 %v944_v57, %v942_v7  ;;  %v2367_v57 = vld [vmem:[#allocation8 + $0x2] ss:$0 sm:$0xff] }
 0x48b   :  { %1004 = vmatpush.bf16.msra.mxu0 %v1003_v58 }
 0x48f   :  { %1005 = vmatpush.bf16.msra.mxu0 %v1002_v59 }
 0x493   :  { %1006 = vmatpush.bf16.msra.mxu0 %v1001_v60 }
 0x497   :  { %1007 = vmatpush.bf16.msra.mxu0 %v1000_v61  ;;  %v966_v61 = vpop.f32.mrf.mxu3 }
 0x49b   :  { %1008 = vmatpush.bf16.msra.mxu0 %v999_v62 }
 0x49f   :  { %1009 = vmatpush.bf16.msra.mxu0 %v998_v14 }
 0x4a3   :  { %1010 = vmatpush.bf16.msra.mxu0 %v997_v63 }
 0x4a7   :  { %1011 = vmatpush.bf16.msra.mxu0 %v996_v0 }
 0x4aa   :  { %1012 = vmatmul.bf16.vlgmr.msra.gmra.mxu0 %v2285_v16  ;;  %v1984_v16 = vld [vmem:[#allocation7 + $0x1e4] sm:$0xf0] }
 0x4ba   :  { %1017 = vmatmul.bf16.gmra.mxu0 %v2289_v17  ;;  %v1894_v17 = vor.u32 %v1984_v16, %v1893_v9 }
 0x4bc   :  { %1196 = vmatpush.bf16.msra.mxu1 %v1894_v17 }
 0x4ca   :  { %1022 = vmatmul.bf16.gmra.mxu0 %v2293_v18  ;;  %v1885_v18 = vld [vmem:[#allocation7 + $0x1d0] sm:$0xf] }
 0x4cb   :  { %v1886_v15 = vor.u32 %v1982_v12, %v1885_v18 }
 0x4cd   :  { %1197 = vmatpush.bf16.msra.mxu1 %v1886_v15 }
 0x4da   :  { %1027 = vmatmul.bf16.gmra.mxu0 %v2297_v19  ;;  %v1898_v19 = vor.u32 %v1983_v10, %v1895_v11 }
 0x4dc   :  { %1245 = vmatpush.bf16.msra.mxu2 %v1898_v19 }
 0x4ea   :  { %1032 = vmatmul.bf16.gmra.mxu0 %v2301_v20  ;;  %v1887_v20 = vld [vmem:[#allocation7 + $0x1d8] sm:$0xf0] }
 0x4eb   :  { %v1890_v22 = vor.u32 %v1981_v13, %v1887_v20 }
 0x4ed   :  { %1246 = vmatpush.bf16.msra.mxu2 %v1890_v22 }
 0x4f1   :  { %1247 = vmatpush.bf16.msra.mxu2 %v1882_v27 }
 0x4f5   :  { %1248 = vmatpush.bf16.msra.mxu2 %v1874_v34 }
 0x4f9   :  { %1249 = vmatpush.bf16.msra.mxu2 %v1866_v40 }
 0x4fa   :  { %1037 = vmatmul.bf16.gmra.mxu0 %v2305_v21  ;;  %v1878_v21 = vor.u32 %v1980_v24, %v1877_v23 }
 0x4fc   :  { %1198 = vmatpush.bf16.msra.mxu1 %v1878_v21 }
 0x4fd   :  { %1250 = vmatpush.bf16.msra.mxu2 %v1858_v47 }
 0x500   :  { %1199 = vmatpush.bf16.msra.mxu1 %v1870_v33 }
 0x504   :  { %1200 = vmatpush.bf16.msra.mxu1 %v1862_v38 }
 0x508   :  { %1201 = vmatpush.bf16.msra.mxu1 %v1854_v44 }
 0x50a   :  { %1042 = vmatmul.bf16.gmra.mxu0 %v2309_v45  ;;  %v1971_v45 = vld [vmem:[#allocation7 + $0x184] sm:$0xf] }
 0x50b   :  { %v1850_v53 = vor.u32 %v1971_v45, %v1847_v52 }
 0x50c   :  { %1202 = vmatpush.bf16.msra.mxu1 %v1846_v51 }
 0x50d   :  { %1251 = vmatpush.bf16.msra.mxu2 %v1850_v53 }
 0x51a   :  { %1047 = vmatmul.bf16.gmra.mxu0 %v2312_v1  ;;  %v968_v1 = vpop.f32.mrf.mxu3 }
 0x522   :  { %v971_v10 = vpop.f32.mrf.mxu3 }
 0x527   :  { %v1013_v56 = vpop.f32.mrf.mxu0 }
 0x528   :  { %v1014_v7 = vadd.f32 %v1013_v56, %v956_v35 }
 0x52a   :  { %v1058_v59 = vadd.f32 %v2367_v57, %v1014_v7  ;;  %v973_v12 = vpop.f32.mrf.mxu3 }
 0x52c   :  { %v1074_v14 = vmax.f32 %v1058_v59, 0.0 }
 0x52f   :  { %v1015_v58 = vpop.f32.mrf.mxu0 }
 0x530   :  { %v1016_v60 = vadd.f32 %v1015_v58, %v958_v50 }
 0x532   :  { %v1059_v62 = vadd.f32 %v2367_v57, %v1016_v60  ;;  %v976_v26 = vpop.f32.mrf.mxu3 }
 0x534   :  { %v1075_v63 = vmax.f32 %v1059_v62, 0.0 }
 0x536   :  { %v1090_v0 = vpack.c.bf16 %v1075_v63, %v1074_v14 }
 0x537   :  { %v1018_v2 = vpop.f32.mrf.mxu0 }
 0x538   :  { %1203 = vmatmul.bf16.vlgmr.msra.gmra.mxu1 %v1090_v0  ;;  %1252 = vmatmul.bf16.vlgmr.msra.gmra.mxu2 %v1090_v0  ;;  %v1019_v3 = vadd.f32 %v1018_v2, %v961_v54 }
 0x53a   :  { %v1060_v5 = vadd.f32 %v2367_v57, %v1019_v3  ;;  %v978_v33 = vpop.f32.mrf.mxu3 }
 0x53c   :  { %v1076_v9 = vmax.f32 %v1060_v5, 0.0 }
 0x53f   :  { %v1020_v4 = vpop.f32.mrf.mxu0 }
 0x540   :  { %v1021_v6 = vadd.f32 %v1020_v4, %v963_v55 }
 0x542   :  { %v1061_v8 = vadd.f32 %v2367_v57, %v1021_v6  ;;  %v981_v31 = vpop.f32.mrf.mxu3 }
 0x544   :  { %v1077_v16 = vmax.f32 %v1061_v8, 0.0 }
 0x546   :  { %v1091_v17 = vpack.c.bf16 %v1077_v16, %v1076_v9 }
 0x547   :  { %v1023_v11 = vpop.f32.mrf.mxu0 }
 0x548   :  { %1208 = vmatmul.bf16.gmra.mxu1 %v1091_v17  ;;  %1257 = vmatmul.bf16.gmra.mxu2 %v1091_v17  ;;  %v1024_v18 = vadd.f32 %v1023_v11, %v966_v61 }
 0x54a   :  { %v1062_v13 = vadd.f32 %v2367_v57, %v1024_v18  ;;  %v983_v46 = vpop.f32.mrf.mxu3 }
 0x54c   :  { %v1078_v22 = vmax.f32 %v1062_v13, 0.0 }
 0x54f   :  { %v1025_v19 = vpop.f32.mrf.mxu0 }
 0x550   :  { %v1026_v20 = vadd.f32 %v1025_v19, %v968_v1 }
 0x552   :  { %v1063_v15 = vadd.f32 %v2367_v57, %v1026_v20  ;;  %v986_v51 = vpop.f32.mrf.mxu3 }
 0x554   :  { %v1079_v23 = vmax.f32 %v1063_v15, 0.0 }
 0x556   :  { %v1092_v24 = vpack.c.bf16 %v1079_v23, %v1078_v22 }
 0x557   :  { %v1028_v25 = vpop.f32.mrf.mxu0 }
 0x558   :  { %1213 = vmatmul.bf16.gmra.mxu1 %v1092_v24  ;;  %1262 = vmatmul.bf16.gmra.mxu2 %v1092_v24  ;;  %v1029_v21 = vadd.f32 %v1028_v25, %v971_v10 }
 0x55a   :  { %v1064_v28 = vadd.f32 %v2367_v57, %v1029_v21  ;;  %v988_v7 = vpop.f32.mrf.mxu3 }
 0x55c   :  { %v1080_v30 = vmax.f32 %v1064_v28, 0.0 }
 0x55f   :  { %v1030_v27 = vpop.f32.mrf.mxu0 }
 0x560   :  { %v1031_v29 = vadd.f32 %v1030_v27, %v973_v12 }
 0x562   :  { %v1065_v32 = vadd.f32 %v2367_v57, %v1031_v29  ;;  %v991_v0 = vpop.f32.mrf.mxu3 }
 0x564   :  { %v1081_v34 = vmax.f32 %v1065_v32, 0.0 }
 0x566   :  { %v1093_v35 = vpack.c.bf16 %v1081_v34, %v1080_v30 }
 0x567   :  { %v1033_v36 = vpop.f32.mrf.mxu0 }
 0x568   :  { %1218 = vmatmul.bf16.gmra.mxu1 %v1093_v35  ;;  %1267 = vmatmul.bf16.gmra.mxu2 %v1093_v35  ;;  %v1034_v37 = vadd.f32 %v1033_v36, %v976_v26 }
 0x56a   :  { %v1066_v39 = vadd.f32 %v2367_v57, %v1034_v37  ;;  %v993_v4 = vpop.f32.mrf.mxu3 }
 0x56c   :  { %v1082_v42 = vmax.f32 %v1066_v39, 0.0  ;;  %v2068_v39 = vld [vmem:[#allocation5 + $0x10] sm:$0xff] }
 0x56f   :  { %v1035_v38 = vpop.f32.mrf.mxu0 }
 0x570   :  { %v1036_v40 = vadd.f32 %v1035_v38, %v978_v33  ;;  %v2067_v38 = vld [vmem:[#allocation5 + $0x8] sm:$0xff] }
 0x572   :  { %v1067_v41 = vadd.f32 %v2367_v57, %v1036_v40  ;;  %v2069_v40 = vld [vmem:[#allocation5 + $0x18] sm:$0xff] }
 0x574   :  { %v1083_v43 = vmax.f32 %v1067_v41, 0.0  ;;  %v2070_v41 = vld [vmem:[#allocation5 + $0x20] sm:$0xff] }
 0x576   :  { %v1094_v44 = vpack.c.bf16 %v1083_v43, %v1082_v42  ;;  %v2071_v42 = vld [vmem:[#allocation5 + $0x28] sm:$0xff]  ;;  %v2072_v43 = vld [vmem:[#allocation5 + $0x30] sm:$0xff] }
 0x577   :  { %v1038_v47 = vpop.f32.mrf.mxu0 }
 0x578   :  { %1223 = vmatmul.bf16.gmra.mxu1 %v1094_v44  ;;  %1272 = vmatmul.bf16.gmra.mxu2 %v1094_v44  ;;  %v1039_v48 = vadd.f32 %v1038_v47, %v981_v31  ;;  %v2066_v31 = vld [vmem:[#allocation5] sm:$0xff]  ;;  %v2073_v47 = vld [vmem:[#allocation5 + $0x38] sm:$0xff] }
 0x57a   :  { %v1068_v45 = vadd.f32 %v2367_v57, %v1039_v48 }
 0x57c   :  { %v1084_v53 = vmax.f32 %v1068_v45, 0.0 }
 0x57f   :  { %v1040_v49 = vpop.f32.mrf.mxu0 }
 0x580   :  { %v1041_v50 = vadd.f32 %v1040_v49, %v983_v46  ;;  %v1371_v49 = vlaneseq }
 0x582   :  { %v1069_v52 = vadd.f32 %v2367_v57, %v1041_v50  ;;  %v2385_v45 = vand.u32 127, %v1371_v49  ;;  %v2387_v50 = vld [vmem:[#allocation8 + $0x3] ss:$0 sm:$0xff] }
 0x584   :  { %v1085_v54 = vmax.f32 %v1069_v52, 0.0  ;;  %vm1373_vm0 = vcmp.lt.s32.totalorder %v2385_v45, 8 }
 0x586   :  { %v1095_v55 = vpack.c.bf16 %v1085_v54, %v1084_v53 }
 0x587   :  { %v1043_v56 = vpop.f32.mrf.mxu0 }
 0x588   :  { %1228 = vmatmul.bf16.gmra.mxu1 %v1095_v55  ;;  %1277 = vmatmul.bf16.gmra.mxu2 %v1095_v55  ;;  %v1044_v58 = vadd.f32 %v1043_v56, %v986_v51 }
 0x58a   :  { %v1070_v60 = vadd.f32 %v2367_v57, %v1044_v58 }
 0x58c   :  { %v1086_v14 = vmax.f32 %v1070_v60, 0.0 }
 0x58f   :  { %v1045_v59 = vpop.f32.mrf.mxu0 }
 0x590   :  { %v1046_v61 = vadd.f32 %v1045_v59, %v988_v7 }
 0x592   :  { %v1071_v62 = vadd.f32 %v2367_v57, %v1046_v61 }
 0x594   :  { %v1087_v63 = vmax.f32 %v1071_v62, 0.0 }
 0x596   :  { %v1096_v2 = vpack.c.bf16 %v1087_v63, %v1086_v14 }
 0x597   :  { %v1048_v1 = vpop.f32.mrf.mxu0 }
 0x598   :  { %1233 = vmatmul.bf16.gmra.mxu1 %v1096_v2  ;;  %1282 = vmatmul.bf16.gmra.mxu2 %v1096_v2  ;;  %v1049_v3 = vadd.f32 %v1048_v1, %v991_v0 }
 0x59a   :  { %v1072_v6 = vadd.f32 %v2367_v57, %v1049_v3 }
 0x59c   :  { %v1088_v16 = vmax.f32 %v1072_v6, 0.0 }
 0x59f   :  { %v1050_v5 = vpop.f32.mrf.mxu0 }
 0x5a0   :  { %v1051_v8 = vadd.f32 %v1050_v5, %v993_v4 }
 0x5a2   :  { %v1073_v9 = vadd.f32 %v2367_v57, %v1051_v8 }
 0x5a4   :  { %v1089_v10 = vmax.f32 %v1073_v9, 0.0 }
 0x5a6   :  { %v1097_v17 = vpack.c.bf16 %v1089_v10, %v1088_v16 }
 0x5a8   :  { %1238 = vmatmul.bf16.gmra.mxu1 %v1097_v17  ;;  %1287 = vmatmul.bf16.gmra.mxu2 %v1097_v17 }
 0x5b5   :  { %v1204_v11 = vpop.f32.mrf.mxu1 }
 0x5bb   :  { %v1253_v44 = vpop.f32.mrf.mxu2 }
 0x5bd   :  { %v1206_v18 = vpop.f32.mrf.mxu1 }
 0x5be   :  { %v1293_v12 = vpack.c.bf16 %v1206_v18, %v1204_v11 }
 0x5c3   :  { %v1255_v46 = vpop.f32.mrf.mxu2 }
 0x5c5   :  { %v1209_v19 = vpop.f32.mrf.mxu1 }
 0x5cb   :  { %v1258_v48 = vpop.f32.mrf.mxu2 }
 0x5cd   :  { %v1211_v13 = vpop.f32.mrf.mxu1 }
 0x5ce   :  { %v1294_v20 = vpack.c.bf16 %v1211_v13, %v1209_v19 }
 0x5d3   :  { %v1260_v51 = vpop.f32.mrf.mxu2 }
 0x5d5   :  { %v1214_v15 = vpop.f32.mrf.mxu1 }
 0x5db   :  { %v1263_v58 = vpop.f32.mrf.mxu2 }
 0x5dd   :  { %v1216_v22 = vpop.f32.mrf.mxu1 }
 0x5de   :  { %v1295_v23 = vpack.c.bf16 %v1216_v22, %v1214_v15 }
 0x5e3   :  { %v1265_v63 = vpop.f32.mrf.mxu2 }
 0x5e5   :  { %v1219_v24 = vpop.f32.mrf.mxu1 }
 0x5eb   :  { %v1268_v5 = vpop.f32.mrf.mxu2 }
 0x5ed   :  { %v1221_v25 = vpop.f32.mrf.mxu1 }
 0x5ee   :  { %v1296_v26 = vpack.c.bf16 %v1221_v25, %v1219_v24 }
 0x5f3   :  { %v1270_v10 = vpop.f32.mrf.mxu2 }
 0x5f5   :  { %v1224_v21 = vpop.f32.mrf.mxu1 }
 0x5fd   :  { %v1226_v27 = vpop.f32.mrf.mxu1 }
 0x5fe   :  { %v1297_v37 = vpack.c.bf16 %v1226_v27, %v1224_v21 }
 0x605   :  { %v1229_v57 = vpop.f32.mrf.mxu1 }
 0x60d   :  { %v1231_v28 = vpop.f32.mrf.mxu1 }
 0x60e   :  { %v1298_v36 = vpack.c.bf16 %v1231_v28, %v1229_v57 }
 0x615   :  { %v1234_v29 = vpop.f32.mrf.mxu1 }
 0x61d   :  { %v1236_v32 = vpop.f32.mrf.mxu1 }
 0x61e   :  { %v1299_v35 = vpack.c.bf16 %v1236_v32, %v1234_v29 }
 0x625   :  { %v1239_v33 = vpop.f32.mrf.mxu1 }
 0x62d   :  { %v1241_v30 = vpop.f32.mrf.mxu1 }
 0x62e   :  { %v1300_v34 = vpack.c.bf16 %v1241_v30, %v1239_v33 }
 0x630   :  { %1301 = vmatpush.bf16.msra.mxu3 %v1300_v34 }
 0x634   :  { %1302 = vmatpush.bf16.msra.mxu3 %v1299_v35 }
 0x638   :  { %1303 = vmatpush.bf16.msra.mxu3 %v1298_v36 }
 0x63c   :  { %1304 = vmatpush.bf16.msra.mxu3 %v1297_v37 }
 0x640   :  { %1305 = vmatpush.bf16.msra.mxu3 %v1296_v26 }
 0x644   :  { %1306 = vmatpush.bf16.msra.mxu3 %v1295_v23 }
 0x648   :  { %1307 = vmatpush.bf16.msra.mxu3 %v1294_v20  ;;  %v1273_v20 = vpop.f32.mrf.mxu2 }
 0x64c   :  { %1308 = vmatpush.bf16.msra.mxu3 %v1293_v12 }
 0x64f   :  { %1309 = vmatmul.bf16.vlgmr.msra.gmra.mxu3 %v2066_v31 }
 0x650   :  { %v1275_v26 = vpop.f32.mrf.mxu2 }
 0x658   :  { %v1278_v32 = vpop.f32.mrf.mxu2 }
 0x65f   :  { %1314 = vmatmul.bf16.gmra.mxu3 %v2067_v38 }
 0x660   :  { %v1280_v36 = vpop.f32.mrf.mxu2 }
 0x66f   :  { %1319 = vmatmul.bf16.gmra.mxu3 %v2068_v39 }
 0x67f   :  { %1324 = vmatmul.bf16.gmra.mxu3 %v2069_v40 }
 0x68f   :  { %1329 = vmatmul.bf16.gmra.mxu3 %v2070_v41 }
 0x69f   :  { %1334 = vmatmul.bf16.gmra.mxu3 %v2071_v42  ;;  %v1283_v42 = vpop.f32.mrf.mxu2 }
 0x6a7   :  { %v1285_v49 = vpop.f32.mrf.mxu2 }
 0x6af   :  { %1339 = vmatmul.bf16.gmra.mxu3 %v2072_v43 }
 0x6bf   :  { %1344 = vmatmul.bf16.gmra.mxu3 %v2073_v47 }
 0x6d2   :  { %v1310_v52 = vpop.f32.mrf.mxu3 }
 0x6d3   :  { %v1311_v53 = vadd.f32 %v1310_v52, %v1253_v44 }
 0x6d5   :  { %v1355_v54 = vadd.f32 %v2387_v50, %v1311_v53 }
 0x6d7   :  { %v2393_v55 = vsel %vm1373_vm0, %v1355_v54, -1e+30 }
 0x6d8   :  { %1390 = vmax.xlane.f32.xlu0 %v2393_v55 }
 0x6da   :  { %v1312_v56 = vpop.f32.mrf.mxu3 }
 0x6db   :  { %v1313_v7 = vadd.f32 %v1312_v56, %v1255_v46 }
 0x6dd   :  { %v1356_v59 = vadd.f32 %v2387_v50, %v1313_v7  ;;  %v1288_v7 = vpop.f32.mrf.mxu2 }
 0x6df   :  { %v2399_v60 = vsel %vm1373_vm0, %v1356_v59, -1e+30 }
 0x6e0   :  { %1392 = vmax.xlane.f32.xlu0 %v2399_v60 }
 0x6e2   :  { %v1315_v61 = vpop.f32.mrf.mxu3 }
 0x6e3   :  { %v1316_v62 = vadd.f32 %v1315_v61, %v1258_v48 }
 0x6e5   :  { %v1357_v14 = vadd.f32 %v2387_v50, %v1316_v62 }
 0x6e7   :  { %v2405_v0 = vsel %vm1373_vm0, %v1357_v14, -1e+30  ;;  %v1290_v14 = vpop.f32.mrf.mxu2 }
 0x6e8   :  { %1394 = vmax.xlane.f32.xlu1 %v2405_v0 }
 0x6ea   :  { %v1317_v2 = vpop.f32.mrf.mxu3 }
 0x6eb   :  { %v1318_v1 = vadd.f32 %v1317_v2, %v1260_v51 }
 0x6ed   :  { %v1358_v3 = vadd.f32 %v2387_v50, %v1318_v1 }
 0x6ef   :  { %v2411_v4 = vsel %vm1373_vm0, %v1358_v3, -1e+30 }
 0x6f0   :  { %1396 = vmax.xlane.f32.xlu1 %v2411_v4 }
 0x6f2   :  { %v1320_v6 = vpop.f32.mrf.mxu3 }
 0x6f3   :  { %v1321_v8 = vadd.f32 %v1320_v6, %v1263_v58 }
 0x6f5   :  { %v1359_v9 = vadd.f32 %v2387_v50, %v1321_v8 }
 0x6f7   :  { %v2417_v16 = vsel %vm1373_vm0, %v1359_v9, -1e+30 }
 0x6f8   :  { %1398 = vmax.xlane.f32.xlu2 %v2417_v16 }
 0x6fa   :  { %v1322_v17 = vpop.f32.mrf.mxu3 }
 0x6fb   :  { %v1323_v11 = vadd.f32 %v1322_v17, %v1265_v63 }
 0x6fd   :  { %v1360_v18 = vadd.f32 %v2387_v50, %v1323_v11 }
 0x6ff   :  { %v2423_v12 = vsel %vm1373_vm0, %v1360_v18, -1e+30 }
 0x700   :  { %1400 = vmax.xlane.f32.xlu2 %v2423_v12 }
 0x702   :  { %v1325_v19 = vpop.f32.mrf.mxu3 }
 0x703   :  { %v1326_v13 = vadd.f32 %v1325_v19, %v1268_v5 }
 0x705   :  { %v1361_v15 = vadd.f32 %v2387_v50, %v1326_v13 }
 0x707   :  { %v2429_v22 = vsel %vm1373_vm0, %v1361_v15, -1e+30 }
 0x708   :  { %1402 = vmax.xlane.f32.xlu0 %v2429_v22 }
 0x70a   :  { %v1327_v23 = vpop.f32.mrf.mxu3 }
 0x70b   :  { %v1328_v24 = vadd.f32 %v1327_v23, %v1270_v10 }
 0x70d   :  { %v1362_v25 = vadd.f32 %v2387_v50, %v1328_v24 }
 0x70f   :  { %v2435_v21 = vsel %vm1373_vm0, %v1362_v25, -1e+30 }
 0x710   :  { %1404 = vmax.xlane.f32.xlu1 %v2435_v21 }
 0x712   :  { %v1330_v27 = vpop.f32.mrf.mxu3 }
 0x713   :  { %v1331_v57 = vadd.f32 %v1330_v27, %v1273_v20 }
 0x715   :  { %v1363_v28 = vadd.f32 %v2387_v50, %v1331_v57 }
 0x717   :  { %v2441_v29 = vsel %vm1373_vm0, %v1363_v28, -1e+30 }
 0x718   :  { %1406 = vmax.xlane.f32.xlu2 %v2441_v29 }
 0x71a   :  { %v1332_v33 = vpop.f32.mrf.mxu3 }
 0x71b   :  { %v1333_v30 = vadd.f32 %v1332_v33, %v1275_v26 }
 0x71d   :  { %v1364_v34 = vadd.f32 %v2387_v50, %v1333_v30 }
 0x71f   :  { %v2447_v35 = vsel %vm1373_vm0, %v1364_v34, -1e+30 }
 0x720   :  { %1408 = vmax.xlane.f32.xlu0 %v2447_v35 }
 0x722   :  { %v1335_v37 = vpop.f32.mrf.mxu3 }
 0x723   :  { %v1336_v31 = vadd.f32 %v1335_v37, %v1278_v32 }
 0x725   :  { %v1365_v38 = vadd.f32 %v2387_v50, %v1336_v31 }
 0x727   :  { %v2453_v39 = vsel %vm1373_vm0, %v1365_v38, -1e+30 }
 0x728   :  { %1410 = vmax.xlane.f32.xlu1 %v2453_v39 }
 0x72a   :  { %v1337_v40 = vpop.f32.mrf.mxu3 }
 0x72b   :  { %v1338_v41 = vadd.f32 %v1337_v40, %v1280_v36 }
 0x72d   :  { %v1366_v43 = vadd.f32 %v2387_v50, %v1338_v41 }
 0x72f   :  { %v2459_v44 = vsel %vm1373_vm0, %v1366_v43, -1e+30 }
 0x730   :  { %1412 = vmax.xlane.f32.xlu2 %v2459_v44 }
 0x732   :  { %v1340_v46 = vpop.f32.mrf.mxu3 }
 0x733   :  { %v1341_v47 = vadd.f32 %v1340_v46, %v1283_v42 }
 0x735   :  { %v1367_v48 = vadd.f32 %v2387_v50, %v1341_v47 }
 0x737   :  { %v2465_v51 = vsel %vm1373_vm0, %v1367_v48, -1e+30 }
 0x738   :  { %1414 = vmax.xlane.f32.xlu0 %v2465_v51 }
 0x73a   :  { %v1342_v52 = vpop.f32.mrf.mxu3 }
 0x73b   :  { %v1343_v53 = vadd.f32 %v1342_v52, %v1285_v49 }
 0x73d   :  { %v1368_v54 = vadd.f32 %v2387_v50, %v1343_v53 }
 0x73f   :  { %v2471_v56 = vsel %vm1373_vm0, %v1368_v54, -1e+30 }
 0x740   :  { %1416 = vmax.xlane.f32.xlu1 %v2471_v56 }
 0x742   :  { %v1345_v58 = vpop.f32.mrf.mxu3 }
 0x743   :  { %v1346_v59 = vadd.f32 %v1345_v58, %v1288_v7 }
 0x745   :  { %v1369_v61 = vadd.f32 %v2387_v50, %v1346_v59 }
 0x747   :  { %v2477_v62 = vsel %vm1373_vm0, %v1369_v61, -1e+30 }
 0x748   :  { %1418 = vmax.xlane.f32.xlu2 %v2477_v62 }
 0x74a   :  { %v1347_v63 = vpop.f32.mrf.mxu3 }
 0x74b   :  { %v1348_v2 = vadd.f32 %v1347_v63, %v1290_v14  ;;  %v1391_v1 = vpop.xlane.xlu0 %1390 }
 0x74c   :  { %v2481_v3 = vsub.f32 %v2393_v55, %v1391_v1 }
 0x74d   :  { %v1370_v5 = vadd.f32 %v2387_v50, %v1348_v2 }
 0x74e   :  { %v1438_v6 = vmul.f32 1.442695, %v2481_v3 }
 0x74f   :  { %v2487_v8 = vsel %vm1373_vm0, %v1370_v5, -1e+30 }
 0x750   :  { %2002 = vpow2.f32 %v1438_v6  ;;  %1420 = vmax.xlane.f32.xlu0 %v2487_v8 }
 0x753   :  { %v1393_v9 = vpop.xlane.xlu0 %1392 }
 0x754   :  { %v2491_v10 = vsub.f32 %v2399_v60, %v1393_v9 }
 0x756   :  { %v2003_v17 = vpop.eup %2002  ;;  %v1440_v11 = vmul.f32 1.442695, %v2491_v10 }
 0x757   :  { %1470 = vadd.xlane.f32.xlu1 %v2003_v17 }
 0x758   :  { %2004 = vpow2.f32 %v1440_v11 }
 0x75b   :  { %v1395_v55 = vpop.xlane.xlu1 %1394 }
 0x75c   :  { %v2495_v50 = vsub.f32 %v2405_v0, %v1395_v55 }
 0x75e   :  { %v2005_v18 = vpop.eup %2004  ;;  %v1442_v45 = vmul.f32 1.442695, %v2495_v50 }
 0x75f   :  { %1472 = vadd.xlane.f32.xlu2 %v2005_v18 }
 0x760   :  { %2006 = vpow2.f32 %v1442_v45 }
 0x763   :  { %v1397_v19 = vpop.xlane.xlu1 %1396 }
 0x764   :  { %v2499_v13 = vsub.f32 %v2411_v4, %v1397_v19 }
 0x766   :  { %v2007_v60 = vpop.eup %2006  ;;  %v1444_v20 = vmul.f32 1.442695, %v2499_v13 }
 0x767   :  { %1474 = vadd.xlane.f32.xlu0 %v2007_v60 }
 0x768   :  { %2008 = vpow2.f32 %v1444_v20 }
 0x76b   :  { %v1399_v15 = vpop.xlane.xlu2 %1398 }
 0x76c   :  { %v2503_v23 = vsub.f32 %v2417_v16, %v1399_v15 }
 0x76e   :  { %v2009_v0 = vpop.eup %2008  ;;  %v1446_v24 = vmul.f32 1.442695, %v2503_v23 }
 0x76f   :  { %1476 = vadd.xlane.f32.xlu1 %v2009_v0 }
 0x770   :  { %2010 = vpow2.f32 %v1446_v24 }
 0x773   :  { %v1401_v25 = vpop.xlane.xlu2 %1400 }
 0x774   :  { %v2507_v26 = vsub.f32 %v2423_v12, %v1401_v25 }
 0x776   :  { %v2011_v4 = vpop.eup %2010  ;;  %v1448_v27 = vmul.f32 1.442695, %v2507_v26 }
 0x777   :  { %1478 = vadd.xlane.f32.xlu2 %v2011_v4 }
 0x778   :  { %2012 = vpow2.f32 %v1448_v27 }
 0x77b   :  { %v1403_v57 = vpop.xlane.xlu0 %1402 }
 0x77c   :  { %v2511_v28 = vsub.f32 %v2429_v22, %v1403_v57 }
 0x77e   :  { %v2013_v16 = vpop.eup %2012  ;;  %v1450_v32 = vmul.f32 1.442695, %v2511_v28 }
 0x77f   :  { %1480 = vadd.xlane.f32.xlu0 %v2013_v16 }
 0x780   :  { %2014 = vpow2.f32 %v1450_v32 }
 0x783   :  { %v1405_v33 = vpop.xlane.xlu1 %1404 }
 0x784   :  { %v2515_v30 = vsub.f32 %v2435_v21, %v1405_v33 }
 0x786   :  { %v2015_v12 = vpop.eup %2014  ;;  %v1452_v34 = vmul.f32 1.442695, %v2515_v30 }
 0x787   :  { %1482 = vadd.xlane.f32.xlu1 %v2015_v12 }
 0x788   :  { %2016 = vpow2.f32 %v1452_v34 }
 0x78b   :  { %v1407_v36 = vpop.xlane.xlu2 %1406 }
 0x78c   :  { %v2519_v37 = vsub.f32 %v2441_v29, %v1407_v36 }
 0x78e   :  { %v2017_v22 = vpop.eup %2016  ;;  %v1454_v31 = vmul.f32 1.442695, %v2519_v37 }
 0x78f   :  { %1484 = vadd.xlane.f32.xlu2 %v2017_v22 }
 0x790   :  { %2018 = vpow2.f32 %v1454_v31 }
 0x793   :  { %v1409_v38 = vpop.xlane.xlu0 %1408 }
 0x794   :  { %v2523_v40 = vsub.f32 %v2447_v35, %v1409_v38 }
 0x796   :  { %v2019_v21 = vpop.eup %2018  ;;  %v1456_v41 = vmul.f32 1.442695, %v2523_v40 }
 0x797   :  { %1486 = vadd.xlane.f32.xlu0 %v2019_v21 }
 0x798   :  { %2020 = vpow2.f32 %v1456_v41 }
 0x79b   :  { %v1411_v42 = vpop.xlane.xlu1 %1410 }
 0x79c   :  { %v2527_v43 = vsub.f32 %v2453_v39, %v1411_v42 }
 0x79e   :  { %v2021_v29 = vpop.eup %2020  ;;  %v1458_v46 = vmul.f32 1.442695, %v2527_v43 }
 0x79f   :  { %1488 = vadd.xlane.f32.xlu1 %v2021_v29 }
 0x7a0   :  { %2022 = vpow2.f32 %v1458_v46 }
 0x7a3   :  { %v1413_v47 = vpop.xlane.xlu2 %1412 }
 0x7a4   :  { %v2531_v48 = vsub.f32 %v2459_v44, %v1413_v47 }
 0x7a6   :  { %v2023_v35 = vpop.eup %2022  ;;  %v1460_v49 = vmul.f32 1.442695, %v2531_v48 }
 0x7a7   :  { %1490 = vadd.xlane.f32.xlu2 %v2023_v35 }
 0x7a8   :  { %2024 = vpow2.f32 %v1460_v49 }
 0x7ab   :  { %v1415_v52 = vpop.xlane.xlu0 %1414 }
 0x7ac   :  { %v2535_v53 = vsub.f32 %v2465_v51, %v1415_v52 }
 0x7ae   :  { %v2025_v39 = vpop.eup %2024  ;;  %v1462_v54 = vmul.f32 1.442695, %v2535_v53 }
 0x7af   :  { %1492 = vadd.xlane.f32.xlu0 %v2025_v39 }
 0x7b0   :  { %2026 = vpow2.f32 %v1462_v54 }
 0x7b3   :  { %v1417_v7 = vpop.xlane.xlu1 %1416 }
 0x7b4   :  { %v2539_v58 = vsub.f32 %v2471_v56, %v1417_v7 }
 0x7b6   :  { %v2027_v44 = vpop.eup %2026  ;;  %v1464_v59 = vmul.f32 1.442695, %v2539_v58 }
 0x7b7   :  { %1494 = vadd.xlane.f32.xlu1 %v2027_v44 }
 0x7b8   :  { %2028 = vpow2.f32 %v1464_v59 }
 0x7bb   :  { %v1419_v61 = vpop.xlane.xlu2 %1418 }
 0x7bc   :  { %v2543_v14 = vsub.f32 %v2477_v62, %v1419_v61 }
 0x7be   :  { %v2029_v51 = vpop.eup %2028  ;;  %v1466_v63 = vmul.f32 1.442695, %v2543_v14 }
 0x7bf   :  { %1496 = vadd.xlane.f32.xlu2 %v2029_v51 }
 0x7c0   :  { %2030 = vpow2.f32 %v1466_v63 }
 0x7c3   :  { %v1421_v2 = vpop.xlane.xlu0 %1420 }
 0x7c4   :  { %v2547_v1 = vsub.f32 %v2487_v8, %v1421_v2 }
 0x7c6   :  { %v2031_v56 = vpop.eup %2030  ;;  %v1468_v5 = vmul.f32 1.442695, %v2547_v1 }
 0x7c7   :  { %1498 = vadd.xlane.f32.xlu0 %v2031_v56 }
 0x7c8   :  { %2032 = vpow2.f32 %v1468_v5 }
 0x7ca   :  { %v1471_v6 = vpop.xlane.xlu1 %1470 }
 0x7cb   :  { %2034 = vlog2.f32 %v1471_v6 }
 0x7ce   :  { %v2033_v9 = vpop.eup %2032 }
 0x7cf   :  { %1500 = vadd.xlane.f32.xlu1 %v2033_v9 }
 0x7d1   :  { %v2035_v62 = vpop.eup %2034 }
 0x7d2   :  { %v1503_v17 = vmul.f32 0.6931472, %v2035_v62  ;;  %v1473_v11 = vpop.xlane.xlu2 %1472 }
 0x7d3   :  { %2036 = vlog2.f32 %v1473_v11 }
 0x7d4   :  { %v1534_v55 = vsub.f32 %v2481_v3, %v1503_v17 }
 0x7d6   :  { %1550 = vst [vmem:[#allocation10] sm:$0xff] %v1534_v55 }
 0x7d9   :  { %v2037_v18 = vpop.eup %2036 }
 0x7da   :  { %v1505_v45 = vmul.f32 0.6931472, %v2037_v18  ;;  %v1475_v8 = vpop.xlane.xlu0 %1474 }
 0x7db   :  { %2038 = vlog2.f32 %v1475_v8 }
 0x7dc   :  { %v1535_v19 = vsub.f32 %v2491_v10, %v1505_v45 }
 0x7de   :  { %1551 = vst [vmem:[#allocation10 + $0x8] sm:$0xff] %v1535_v19 }
 0x7e1   :  { %v2039_v60 = vpop.eup %2038 }
 0x7e2   :  { %v1507_v20 = vmul.f32 0.6931472, %v2039_v60  ;;  %v1477_v15 = vpop.xlane.xlu1 %1476 }
 0x7e3   :  { %2040 = vlog2.f32 %v1477_v15 }
 0x7e4   :  { %v1536_v0 = vsub.f32 %v2495_v50, %v1507_v20 }
 0x7e6   :  { %1552 = vst [vmem:[#allocation10 + $0x10] sm:$0xff] %v1536_v0 }
 0x7e9   :  { %v2041_v24 = vpop.eup %2040 }
 0x7ea   :  { %v1509_v25 = vmul.f32 0.6931472, %v2041_v24  ;;  %v1479_v4 = vpop.xlane.xlu2 %1478 }
 0x7eb   :  { %2042 = vlog2.f32 %v1479_v4 }
 0x7ec   :  { %v1537_v3 = vsub.f32 %v2499_v13, %v1509_v25 }
 0x7ee   :  { %1553 = vst [vmem:[#allocation10 + $0x18] sm:$0xff] %v1537_v3 }
 0x7f1   :  { %v2043_v27 = vpop.eup %2042 }
 0x7f2   :  { %v1511_v57 = vmul.f32 0.6931472, %v2043_v27  ;;  %v1481_v16 = vpop.xlane.xlu0 %1480 }
 0x7f3   :  { %2044 = vlog2.f32 %v1481_v16 }
 0x7f4   :  { %v1538_v10 = vsub.f32 %v2503_v23, %v1511_v57 }
 0x7f6   :  { %1554 = vst [vmem:[#allocation10 + $0x20] sm:$0xff] %v1538_v10 }
 0x7f9   :  { %v2045_v32 = vpop.eup %2044 }
 0x7fa   :  { %v1513_v33 = vmul.f32 0.6931472, %v2045_v32  ;;  %v1483_v12 = vpop.xlane.xlu1 %1482 }
 0x7fb   :  { %2046 = vlog2.f32 %v1483_v12 }
 0x7fc   :  { %v1539_v50 = vsub.f32 %v2507_v26, %v1513_v33 }
 0x7fe   :  { %1555 = vst [vmem:[#allocation10 + $0x28] sm:$0xff] %v1539_v50 }
 0x801   :  { %v2047_v34 = vpop.eup %2046 }
 0x802   :  { %v1515_v36 = vmul.f32 0.6931472, %v2047_v34  ;;  %v1485_v22 = vpop.xlane.xlu2 %1484 }
 0x803   :  { %2048 = vlog2.f32 %v1485_v22 }
 0x804   :  { %v1540_v13 = vsub.f32 %v2511_v28, %v1515_v36 }
 0x806   :  { %1556 = vst [vmem:[#allocation10 + $0x30] sm:$0xff] %v1540_v13 }
 0x809   :  { %v2049_v31 = vpop.eup %2048 }
 0x80a   :  { %v1517_v38 = vmul.f32 0.6931472, %v2049_v31  ;;  %v1487_v21 = vpop.xlane.xlu0 %1486 }
 0x80b   :  { %2050 = vlog2.f32 %v1487_v21 }
 0x80c   :  { %v1541_v23 = vsub.f32 %v2515_v30, %v1517_v38 }
 0x80e   :  { %1557 = vst [vmem:[#allocation10 + $0x38] sm:$0xff] %v1541_v23 }
 0x811   :  { %v2051_v41 = vpop.eup %2050 }
 0x812   :  { %v1519_v42 = vmul.f32 0.6931472, %v2051_v41  ;;  %v1489_v29 = vpop.xlane.xlu1 %1488 }
 0x813   :  { %2052 = vlog2.f32 %v1489_v29 }
 0x814   :  { %v1542_v26 = vsub.f32 %v2519_v37, %v1519_v42 }
 0x816   :  { %1558 = vst [vmem:[#allocation10 + $0x40] sm:$0xff] %v1542_v26 }
 0x819   :  { %v2053_v46 = vpop.eup %2052 }
 0x81a   :  { %v1521_v47 = vmul.f32 0.6931472, %v2053_v46  ;;  %v1491_v35 = vpop.xlane.xlu2 %1490 }
 0x81b   :  { %2054 = vlog2.f32 %v1491_v35 }
 0x81c   :  { %v1543_v28 = vsub.f32 %v2523_v40, %v1521_v47 }
 0x81e   :  { %1559 = vst [vmem:[#allocation10 + $0x48] sm:$0xff] %v1543_v28 }
 0x821   :  { %v2055_v49 = vpop.eup %2054 }
 0x822   :  { %v1523_v52 = vmul.f32 0.6931472, %v2055_v49  ;;  %v1493_v39 = vpop.xlane.xlu0 %1492 }
 0x823   :  { %2056 = vlog2.f32 %v1493_v39 }
 0x824   :  { %v1544_v30 = vsub.f32 %v2527_v43, %v1523_v52 }
 0x826   :  { %1560 = vst [vmem:[#allocation10 + $0x50] sm:$0xff] %v1544_v30 }
 0x829   :  { %v2057_v54 = vpop.eup %2056 }
 0x82a   :  { %v1525_v7 = vmul.f32 0.6931472, %v2057_v54  ;;  %v1495_v44 = vpop.xlane.xlu1 %1494 }
 0x82b   :  { %2058 = vlog2.f32 %v1495_v44 }
 0x82c   :  { %v1545_v37 = vsub.f32 %v2531_v48, %v1525_v7 }
 0x82e   :  { %1561 = vst [vmem:[#allocation10 + $0x58] sm:$0xff] %v1545_v37 }
 0x831   :  { %v2059_v59 = vpop.eup %2058 }
 0x832   :  { %v1527_v61 = vmul.f32 0.6931472, %v2059_v59  ;;  %v1497_v51 = vpop.xlane.xlu2 %1496 }
 0x833   :  { %2060 = vlog2.f32 %v1497_v51 }
 0x834   :  { %v1546_v40 = vsub.f32 %v2535_v53, %v1527_v61 }
 0x836   :  { %1562 = vst [vmem:[#allocation10 + $0x60] sm:$0xff] %v1546_v40 }
 0x839   :  { %v2061_v63 = vpop.eup %2060 }
 0x83a   :  { %v1529_v2 = vmul.f32 0.6931472, %v2061_v63  ;;  %v1499_v56 = vpop.xlane.xlu0 %1498 }
 0x83b   :  { %2062 = vlog2.f32 %v1499_v56 }
 0x83c   :  { %v1547_v43 = vsub.f32 %v2539_v58, %v1529_v2 }
 0x83e   :  { %1563 = vst [vmem:[#allocation10 + $0x68] sm:$0xff] %v1547_v43 }
 0x841   :  { %v2063_v5 = vpop.eup %2062 }
 0x842   :  { %v1531_v6 = vmul.f32 0.6931472, %v2063_v5  ;;  %v1501_v9 = vpop.xlane.xlu1 %1500 }
 0x843   :  { %2064 = vlog2.f32 %v1501_v9 }
 0x844   :  { %v1548_v48 = vsub.f32 %v2543_v14, %v1531_v6 }
 0x846   :  { %1564 = vst [vmem:[#allocation10 + $0x70] sm:$0xff] %v1548_v48 }
 0x849   :  { %v2065_v62 = vpop.eup %2064 }
 0x84a   :  { %v1533_v53 = vmul.f32 0.6931472, %v2065_v62 }
 0x84c   :  { %v1549_v17 = vsub.f32 %v2547_v1, %v1533_v53 }
 0x84e   :  { %1565 = vst [vmem:[#allocation10 + $0x78] sm:$0xff] %v1549_v17 }
 0x84f   :  { %1578 = dma.vmem_to_hbm [thread:$0]  %s1571_s12, 2048, %s1573_s15, [#allocation4], %s2207_s7, %s2207_s7, %s2208_s8  }
 0x850   :  { %2200 = dma.done.wait [#allocation4], 2048  }
 0x851   :  { %2201 = vsyncadd [#allocation4], 4294965248 }
 0x852   :  { %1583 = vsyncpa [#allocation3], 1 }
 0x853   :  { %1584 = vsyncpa [#allocation6], 1 }
 0x854   :  { %1585 = vsyncpa [#allocation9], 1 }
 0x855   :  { %1586 = vsyncpa [#allocation4], 1 }

</bundles_post_ra>
